<compile_context>
chip_gen: v7x
topology: tpu7x:2x2x1
jax: 0.10.0
libtpu: 0.0.40
codegen_flags: <defaults>
</compile_context>

<pallas_src>
import functools

import jax
import jax.numpy as jnp
from jax.experimental import pallas as pl
from jax.experimental.pallas import tpu as pltpu


def liquid_lstm_kernel(gih_ref,      # (Tc, B, 4H) precomputed x@W_ih0 + b0 for this chunk
                       whh0_ref,     # (H, 4H)
                       w1_ref,       # (2H, 4H) fused [W_ih1; W_hh1]
                       b1_ref,       # (1, 4H)
                       wfc_ref,      # (H, output_size)
                       bfc_ref,      # (1, output_size)
                       out_ref,      # (B, output_size)
                       h0_ref, c0_ref, h1_ref, c1_ref):
    chunk = pl.program_id(0)
    B, H = h0_ref.shape
    four_h = 4 * H
    tc = gih_ref.shape[0]

    @pl.when(chunk == 0)
    def _():
        h0_ref[...] = jnp.zeros_like(h0_ref)
        c0_ref[...] = jnp.zeros_like(c0_ref)
        h1_ref[...] = jnp.zeros_like(h1_ref)
        c1_ref[...] = jnp.zeros_like(c1_ref)

    # Hoist constant loads / broadcasts out of the time loop (JAX does not CSE
    # broadcast_in_dim inside the loop).
    whh0 = whh0_ref[...]
    w1 = w1_ref[...]
    b1 = jnp.broadcast_to(b1_ref[...], (B, four_h))

    # Lane mask selecting the 'g' gate block (lanes [2H, 3H)): tanh there, sigmoid elsewhere.
    lane = jax.lax.broadcasted_iota(jnp.int32, (B, four_h), 1)
    is_g = (lane >= 2 * H) & (lane < 3 * H)

    def activate(gates):
        # Two full-vreg transcendentals + one select instead of four 32-lane slivers.
        act = jnp.where(is_g, jnp.tanh(gates), jax.nn.sigmoid(gates))
        i = act[:, 0 * H:1 * H]
        f = act[:, 1 * H:2 * H]
        g = act[:, 2 * H:3 * H]
        o = act[:, 3 * H:4 * H]
        return i, f, g, o

    def step(t, carry):
        h0, c0, h1, c1 = carry

        # ---- Layer 0: input projection precomputed; only the recurrent matmul remains.
        gates0 = gih_ref[t] + jnp.dot(h0, whh0, preferred_element_type=jnp.float32)
        i0, f0, g0, o0 = activate(gates0)
        c0n = f0 * c0 + i0 * g0
        h0n = o0 * jnp.tanh(c0n)

        # Inter-layer dropout: identity in eval mode.

        # ---- Layer 1: fused [W_ih1; W_hh1] -> single matmul on [h0_t, h1_{t-1}].
        inp1 = jnp.concatenate([h0n, h1], axis=-1)                      # (B, 2H)
        gates1 = jnp.dot(inp1, w1, preferred_element_type=jnp.float32) + b1
        i1, f1, g1, o1 = activate(gates1)
        c1n = f1 * c1 + i1 * g1
        h1n = o1 * jnp.tanh(c1n)

        return h0n, c0n, h1n, c1n

    carry = (h0_ref[...], c0_ref[...], h1_ref[...], c1_ref[...])
    carry = jax.lax.fori_loop(0, tc, step, carry, unroll=(tc <= 32))
    h0n, c0n, h1n, c1n = carry

    h0_ref[...] = h0n
    c0_ref[...] = c0n
    h1_ref[...] = h1n
    c1_ref[...] = c1n

    # Last chunk: dropout(identity) + fully-connected head on the final hidden state.
    @pl.when(chunk == pl.num_programs(0) - 1)
    def _():
        out_ref[...] = (jnp.dot(h1n, wfc_ref[...], preferred_element_type=jnp.float32)
                        + bfc_ref[...])


@functools.partial(jax.jit, static_argnames=("hidden_size", "output_size"))
def liquid_lstm_forward(x, params, *, hidden_size, output_size):
    """x: (B, T, F) float32.  Returns (B, 1, output_size)."""
    B, T, F = x.shape
    H = hidden_size
    four_h = 4 * H
    (wih0, whh0, b0, wih1, whh1, b1, wfc, bfc) = params

    # Hoisted, time-parallel layer-0 input projection as ONE large matmul, written
    # directly in time-major layout so the kernel's per-step access is a cheap
    # leading-axis index.  x is consumed in its native (B, T, F) layout (no transpose).
    gih0 = jnp.einsum("btf,fg->tbg", x, wih0) + b0          # (T, B, 4H)

    # Fused layer-1 weights: one matmul per step on concat([h0, h1]).
    w1 = jnp.concatenate([wih1, whh1], axis=0)              # (2H, 4H)

    # Time chunking: largest chunk <= 256 that divides T (whole T for small sequences).
    tc = min(T, 256)
    while T % tc != 0:
        tc -= 1
    num_chunks = T // tc

    out = pl.pallas_call(
        liquid_lstm_kernel,
        out_shape=jax.ShapeDtypeStruct((B, output_size), jnp.float32),
        grid_spec=pltpu.PrefetchScalarGridSpec(
            num_scalar_prefetch=0,
            grid=(num_chunks,),
            in_specs=[
                pl.BlockSpec((tc, B, four_h), lambda c: (c, 0, 0)),      # precomputed gates_ih0
                pl.BlockSpec((H, four_h), lambda c: (0, 0)),             # W_hh layer 0
                pl.BlockSpec((2 * H, four_h), lambda c: (0, 0)),         # fused layer-1 weights
                pl.BlockSpec((1, four_h), lambda c: (0, 0)),             # bias layer 1
                pl.BlockSpec((H, output_size), lambda c: (0, 0)),        # fc weight
                pl.BlockSpec((1, output_size), lambda c: (0, 0)),        # fc bias
            ],
            out_specs=pl.BlockSpec((B, output_size), lambda c: (0, 0)),
            scratch_shapes=[
                pltpu.VMEM((B, H), jnp.float32),  # h0
                pltpu.VMEM((B, H), jnp.float32),  # c0
                pltpu.VMEM((B, H), jnp.float32),  # h1
                pltpu.VMEM((B, H), jnp.float32),  # c1
            ],
        ),
        compiler_params=pltpu.CompilerParams(
            dimension_semantics=("arbitrary",)),
    )(gih0, whh0, w1, b1, wfc, bfc)

    return out[:, None, :]  # (B, 1, output_size)


def init_params(key, input_size, hidden_size, output_size):
    """Deterministic init mimicking PyTorch's U(-1/sqrt(H), 1/sqrt(H))."""
    H = hidden_size
    bound = 1.0 / jnp.sqrt(jnp.float32(H))
    ks = jax.random.split(key, 12)

    def u(k, shape):
        return jax.random.uniform(k, shape, jnp.float32, -bound, bound)

    # Layer 0 (PyTorch stores (4H, in); we store transposed (in, 4H)).
    wih0 = u(ks[0], (input_size, 4 * H))
    whh0 = u(ks[1], (H, 4 * H))
    b0 = u(ks[2], (1, 4 * H)) + u(ks[3], (1, 4 * H))       # b_ih + b_hh
    # Layer 1
    wih1 = u(ks[4], (H, 4 * H))
    whh1 = u(ks[5], (H, 4 * H))
    b1 = u(ks[6], (1, 4 * H)) + u(ks[7], (1, 4 * H))
    # FC head
    wfc = u(ks[8], (H, output_size))
    bfc = u(ks[9], (1, output_size))
    return (wih0, whh0, b0, wih1, whh1, b1, wfc, bfc)


def reference_forward(x, params, hidden_size, output_size):
    """Pure-JAX reference (matches PyTorch LSTM eval-mode semantics)."""
    (wih0, whh0, b0, wih1, whh1, b1, wfc, bfc) = params
    B, T, F = x.shape
    H = hidden_size

    def cell(inp, h, c, w_ih, w_hh, b):
        gates = inp @ w_ih + h @ w_hh + b
        i = jax.nn.sigmoid(gates[:, 0 * H:1 * H])
        f = jax.nn.sigmoid(gates[:, 1 * H:2 * H])
        g = jnp.tanh(gates[:, 2 * H:3 * H])
        o = jax.nn.sigmoid(gates[:, 3 * H:4 * H])
        c_new = f * c + i * g
        return o * jnp.tanh(c_new), c_new

    h0 = c0 = h1 = c1 = jnp.zeros((B, H), jnp.float32)
    for t in range(T):
        h0, c0 = cell(x[:, t, :], h0, c0, wih0, whh0, b0)
        h1, c1 = cell(h0, h1, c1, wih1, whh1, b1)
    out = h1 @ wfc + bfc
    return out[:, None, :]


if __name__ == "__main__":
    # Small shapes consistent with the module's forward: (B, T, input_size)
    B, T, INPUT_SIZE = 2, 8, 4
    HIDDEN_SIZE, OUTPUT_SIZE = 32, 1

    key = jax.random.PRNGKey(0)
    k_x, k_p = jax.random.split(key)
    x = jax.random.normal(k_x, (B, T, INPUT_SIZE), jnp.float32)
    params = init_params(k_p, INPUT_SIZE, HIDDEN_SIZE, OUTPUT_SIZE)

    out = liquid_lstm_forward(x, params,
                              hidden_size=HIDDEN_SIZE,
                              output_size=OUTPUT_SIZE)
    out = jax.block_until_ready(out)

    ref = reference_forward(x, params, HIDDEN_SIZE, OUTPUT_SIZE)
    assert out.shape == (B, 1, OUTPUT_SIZE), out.shape
    assert jnp.allclose(out, ref, atol=1e-5, rtol=1e-4), (out, ref)

    print("KERNEL_OK")
</pallas_src>

<mosaic_0001>
module attributes {stable_mosaic.version = 11 : i64} {
  func.func @liquid_lstm_kernel(%arg0: i32, %arg1: memref<8x2x128xf32, #tpu.memory_space<vmem>>, %arg2: memref<32x128xf32, #tpu.memory_space<vmem>>, %arg3: memref<64x128xf32, #tpu.memory_space<vmem>>, %arg4: memref<1x128xf32, #tpu.memory_space<vmem>>, %arg5: memref<32x1xf32, #tpu.memory_space<vmem>>, %arg6: memref<1x1xf32, #tpu.memory_space<vmem>>, %arg7: memref<2x1xf32, #tpu.memory_space<vmem>>, %arg8: memref<2x32xf32, #tpu.memory_space<vmem>>, %arg9: memref<2x32xf32, #tpu.memory_space<vmem>>, %arg10: memref<2x32xf32, #tpu.memory_space<vmem>>, %arg11: memref<2x32xf32, #tpu.memory_space<vmem>>) attributes {dimension_semantics = [#tpu.dimension_semantics<arbitrary>], iteration_bounds = array<i64: 1>, scalar_prefetch = 0 : i64, scratch_operands = 4 : i64, tpu.core_type = #tpu.core_type<tc>, window_params = [{transform_indices = @transform_0, window_bounds = array<i64: 8, 2, 128>}, {pipeline_mode = #tpu.pipeline_mode<synchronous>, transform_indices = @transform_1, window_bounds = array<i64: 32, 128>}, {pipeline_mode = #tpu.pipeline_mode<synchronous>, transform_indices = @transform_2, window_bounds = array<i64: 64, 128>}, {pipeline_mode = #tpu.pipeline_mode<synchronous>, transform_indices = @transform_3, window_bounds = array<i64: 1, 128>}, {pipeline_mode = #tpu.pipeline_mode<synchronous>, transform_indices = @transform_4, window_bounds = array<i64: 32, 1>}, {pipeline_mode = #tpu.pipeline_mode<synchronous>, transform_indices = @transform_5, window_bounds = array<i64: 1, 1>}, {pipeline_mode = #tpu.pipeline_mode<synchronous>, transform_indices = @transform_6, window_bounds = array<i64: 2, 1>}]} {
    %c0_i32 = arith.constant 0 : i32
    %0 = arith.cmpi eq, %arg0, %c0_i32 : i32
    %1 = arith.extui %0 : i1 to i32
    %c0_i32_0 = arith.constant 0 : i32
    %2 = arith.cmpi ne, %1, %c0_i32_0 : i32
    scf.if %2 {
      %cst_72 = arith.constant 0.000000e+00 : f32
      %345 = vector.broadcast %cst_72 : f32 to vector<2x32xf32>
      %c0_73 = arith.constant 0 : index
      %c0_74 = arith.constant 0 : index
      %346 = vector.load %arg8[%c0_73, %c0_74] : memref<2x32xf32, #tpu.memory_space<vmem>>, vector<2x32xf32>
      tpu.vector_store %arg8[%c0_73, %c0_74], %345 {strides = array<i32>} : memref<2x32xf32, #tpu.memory_space<vmem>>, vector<2x32xf32>,
      %cst_75 = arith.constant 0.000000e+00 : f32
      %347 = vector.broadcast %cst_75 : f32 to vector<2x32xf32>
      %c0_76 = arith.constant 0 : index
      %c0_77 = arith.constant 0 : index
      %348 = vector.load %arg9[%c0_76, %c0_77] : memref<2x32xf32, #tpu.memory_space<vmem>>, vector<2x32xf32>
      tpu.vector_store %arg9[%c0_76, %c0_77], %347 {strides = array<i32>} : memref<2x32xf32, #tpu.memory_space<vmem>>, vector<2x32xf32>,
      %cst_78 = arith.constant 0.000000e+00 : f32
      %349 = vector.broadcast %cst_78 : f32 to vector<2x32xf32>
      %c0_79 = arith.constant 0 : index
      %c0_80 = arith.constant 0 : index
      %350 = vector.load %arg10[%c0_79, %c0_80] : memref<2x32xf32, #tpu.memory_space<vmem>>, vector<2x32xf32>
      tpu.vector_store %arg10[%c0_79, %c0_80], %349 {strides = array<i32>} : memref<2x32xf32, #tpu.memory_space<vmem>>, vector<2x32xf32>,
      %cst_81 = arith.constant 0.000000e+00 : f32
      %351 = vector.broadcast %cst_81 : f32 to vector<2x32xf32>
      %c0_82 = arith.constant 0 : index
      %c0_83 = arith.constant 0 : index
      %352 = vector.load %arg11[%c0_82, %c0_83] : memref<2x32xf32, #tpu.memory_space<vmem>>, vector<2x32xf32>
      tpu.vector_store %arg11[%c0_82, %c0_83], %351 {strides = array<i32>} : memref<2x32xf32, #tpu.memory_space<vmem>>, vector<2x32xf32>,
    } else {
    }
    %c0 = arith.constant 0 : index
    %c0_1 = arith.constant 0 : index
    %3 = vector.load %arg2[%c0, %c0_1] : memref<32x128xf32, #tpu.memory_space<vmem>>, vector<32x128xf32>
    %c0_2 = arith.constant 0 : index
    %c0_3 = arith.constant 0 : index
    %4 = vector.load %arg3[%c0_2, %c0_3] : memref<64x128xf32, #tpu.memory_space<vmem>>, vector<64x128xf32>
    %c0_4 = arith.constant 0 : index
    %c0_5 = arith.constant 0 : index
    %5 = vector.load %arg4[%c0_4, %c0_5] : memref<1x128xf32, #tpu.memory_space<vmem>>, vector<1x128xf32>
    %6 = vector.shape_cast %5 : vector<1x128xf32> to vector<1x128xf32>
    %7 = vector.broadcast %6 : vector<1x128xf32> to vector<2x128xf32>
    %8 = tpu.iota {dimensions = array<i32: 1>} : vector<2x128xi32>
    %c64_i32 = arith.constant 64 : i32
    %9 = vector.broadcast %c64_i32 : i32 to vector<2x128xi32>
    %10 = arith.cmpi sge, %8, %9 : vector<2x128xi32>
    %c96_i32 = arith.constant 96 : i32
    %11 = vector.broadcast %c96_i32 : i32 to vector<2x128xi32>
    %12 = arith.cmpi slt, %8, %11 : vector<2x128xi32>
    %13 = arith.andi %10, %12 : vector<2x128xi1>
    %c0_6 = arith.constant 0 : index
    %c0_7 = arith.constant 0 : index
    %14 = vector.load %arg8[%c0_6, %c0_7] : memref<2x32xf32, #tpu.memory_space<vmem>>, vector<2x32xf32>
    %c0_8 = arith.constant 0 : index
    %c0_9 = arith.constant 0 : index
    %15 = vector.load %arg9[%c0_8, %c0_9] : memref<2x32xf32, #tpu.memory_space<vmem>>, vector<2x32xf32>
    %c0_10 = arith.constant 0 : index
    %c0_11 = arith.constant 0 : index
    %16 = vector.load %arg10[%c0_10, %c0_11] : memref<2x32xf32, #tpu.memory_space<vmem>>, vector<2x32xf32>
    %c0_12 = arith.constant 0 : index
    %c0_13 = arith.constant 0 : index
    %17 = vector.load %arg11[%c0_12, %c0_13] : memref<2x32xf32, #tpu.memory_space<vmem>>, vector<2x32xf32>
    %c0_i32_14 = arith.constant 0 : i32
    %18 = arith.index_cast %c0_i32_14 : i32 to index
    %c0_15 = arith.constant 0 : index
    %c0_16 = arith.constant 0 : index
    %19 = vector.load %arg1[%18, %c0_15, %c0_16] : memref<8x2x128xf32, #tpu.memory_space<vmem>>, vector<1x2x128xf32>
    %20 = vector.shape_cast %19 : vector<1x2x128xf32> to vector<2x128xf32>
    %cst = arith.constant dense<0.000000e+00> : vector<2x128xf32>
    %21 = tpu.matmul %14, %3, %cst {dimension_numbers = #tpu.dot_dimension_numbers<[1], [0], [0], [1], [0, 0, 1, 1], [], []>} : vector<2x32xf32>, vector<32x128xf32>, vector<2x128xf32> -> vector<2x128xf32>
    %22 = arith.addf %20, %21 : vector<2x128xf32>
    %23 = math.tanh %22 : vector<2x128xf32>
    %24 = arith.negf %22 : vector<2x128xf32>
    %25 = math.exp %24 : vector<2x128xf32>
    %cst_17 = arith.constant 1.000000e+00 : f32
    %26 = vector.broadcast %cst_17 : f32 to vector<2x128xf32>
    %27 = arith.addf %26, %25 : vector<2x128xf32>
    %28 = arith.divf %26, %27 : vector<2x128xf32>
    %29 = arith.select %13, %23, %28 : vector<2x128xi1>, vector<2x128xf32>
    %30 = vector.extract_strided_slice %29 {offsets = [0, 0], sizes = [2, 32], strides = [1, 1]} : vector<2x128xf32> to vector<2x32xf32>
    %31 = vector.extract_strided_slice %29 {offsets = [0, 32], sizes = [2, 32], strides = [1, 1]} : vector<2x128xf32> to vector<2x32xf32>
    %32 = vector.extract_strided_slice %29 {offsets = [0, 64], sizes = [2, 32], strides = [1, 1]} : vector<2x128xf32> to vector<2x32xf32>
    %33 = vector.extract_strided_slice %29 {offsets = [0, 96], sizes = [2, 32], strides = [1, 1]} : vector<2x128xf32> to vector<2x32xf32>
    %34 = arith.mulf %31, %15 : vector<2x32xf32>
    %35 = arith.mulf %30, %32 : vector<2x32xf32>
    %36 = arith.addf %34, %35 : vector<2x32xf32>
    %37 = math.tanh %36 : vector<2x32xf32>
    %38 = arith.mulf %33, %37 : vector<2x32xf32>
    %39 = tpu.concatenate %38, %16 in 1 : vector<2x32xf32>, vector<2x32xf32> -> vector<2x64xf32>
    %cst_18 = arith.constant dense<0.000000e+00> : vector<2x128xf32>
    %40 = tpu.matmul %39, %4, %cst_18 {dimension_numbers = #tpu.dot_dimension_numbers<[1], [0], [0], [1], [0, 0, 1, 1], [], []>} : vector<2x64xf32>, vector<64x128xf32>, vector<2x128xf32> -> vector<2x128xf32>
    %41 = arith.addf %40, %7 : vector<2x128xf32>
    %42 = math.tanh %41 : vector<2x128xf32>
    %43 = arith.negf %41 : vector<2x128xf32>
    %44 = math.exp %43 : vector<2x128xf32>
    %cst_19 = arith.constant 1.000000e+00 : f32
    %45 = vector.broadcast %cst_19 : f32 to vector<2x128xf32>
    %46 = arith.addf %45, %44 : vector<2x128xf32>
    %47 = arith.divf %45, %46 : vector<2x128xf32>
    %48 = arith.select %13, %42, %47 : vector<2x128xi1>, vector<2x128xf32>
    %49 = vector.extract_strided_slice %48 {offsets = [0, 0], sizes = [2, 32], strides = [1, 1]} : vector<2x128xf32> to vector<2x32xf32>
    %50 = vector.extract_strided_slice %48 {offsets = [0, 32], sizes = [2, 32], strides = [1, 1]} : vector<2x128xf32> to vector<2x32xf32>
    %51 = vector.extract_strided_slice %48 {offsets = [0, 64], sizes = [2, 32], strides = [1, 1]} : vector<2x128xf32> to vector<2x32xf32>
    %52 = vector.extract_strided_slice %48 {offsets = [0, 96], sizes = [2, 32], strides = [1, 1]} : vector<2x128xf32> to vector<2x32xf32>
    %53 = arith.mulf %50, %17 : vector<2x32xf32>
    %54 = arith.mulf %49, %51 : vector<2x32xf32>
    %55 = arith.addf %53, %54 : vector<2x32xf32>
    %56 = math.tanh %55 : vector<2x32xf32>
    %57 = arith.mulf %52, %56 : vector<2x32xf32>
    %c1_i32 = arith.constant 1 : i32
    %58 = arith.index_cast %c1_i32 : i32 to index
    %c0_20 = arith.constant 0 : index
    %c0_21 = arith.constant 0 : index
    %59 = vector.load %arg1[%58, %c0_20, %c0_21] : memref<8x2x128xf32, #tpu.memory_space<vmem>>, vector<1x2x128xf32>
    %60 = vector.shape_cast %59 : vector<1x2x128xf32> to vector<2x128xf32>
    %cst_22 = arith.constant dense<0.000000e+00> : vector<2x128xf32>
    %61 = tpu.matmul %38, %3, %cst_22 {dimension_numbers = #tpu.dot_dimension_numbers<[1], [0], [0], [1], [0, 0, 1, 1], [], []>} : vector<2x32xf32>, vector<32x128xf32>, vector<2x128xf32> -> vector<2x128xf32>
    %62 = arith.addf %60, %61 : vector<2x128xf32>
    %63 = math.tanh %62 : vector<2x128xf32>
    %64 = arith.negf %62 : vector<2x128xf32>
    %65 = math.exp %64 : vector<2x128xf32>
    %cst_23 = arith.constant 1.000000e+00 : f32
    %66 = vector.broadcast %cst_23 : f32 to vector<2x128xf32>
    %67 = arith.addf %66, %65 : vector<2x128xf32>
    %68 = arith.divf %66, %67 : vector<2x128xf32>
    %69 = arith.select %13, %63, %68 : vector<2x128xi1>, vector<2x128xf32>
    %70 = vector.extract_strided_slice %69 {offsets = [0, 0], sizes = [2, 32], strides = [1, 1]} : vector<2x128xf32> to vector<2x32xf32>
    %71 = vector.extract_strided_slice %69 {offsets = [0, 32], sizes = [2, 32], strides = [1, 1]} : vector<2x128xf32> to vector<2x32xf32>
    %72 = vector.extract_strided_slice %69 {offsets = [0, 64], sizes = [2, 32], strides = [1, 1]} : vector<2x128xf32> to vector<2x32xf32>
    %73 = vector.extract_strided_slice %69 {offsets = [0, 96], sizes = [2, 32], strides = [1, 1]} : vector<2x128xf32> to vector<2x32xf32>
    %74 = arith.mulf %71, %36 : vector<2x32xf32>
    %75 = arith.mulf %70, %72 : vector<2x32xf32>
    %76 = arith.addf %74, %75 : vector<2x32xf32>
    %77 = math.tanh %76 : vector<2x32xf32>
    %78 = arith.mulf %73, %77 : vector<2x32xf32>
    %79 = tpu.concatenate %78, %57 in 1 : vector<2x32xf32>, vector<2x32xf32> -> vector<2x64xf32>
    %cst_24 = arith.constant dense<0.000000e+00> : vector<2x128xf32>
    %80 = tpu.matmul %79, %4, %cst_24 {dimension_numbers = #tpu.dot_dimension_numbers<[1], [0], [0], [1], [0, 0, 1, 1], [], []>} : vector<2x64xf32>, vector<64x128xf32>, vector<2x128xf32> -> vector<2x128xf32>
    %81 = arith.addf %80, %7 : vector<2x128xf32>
    %82 = math.tanh %81 : vector<2x128xf32>
    %83 = arith.negf %81 : vector<2x128xf32>
    %84 = math.exp %83 : vector<2x128xf32>
    %cst_25 = arith.constant 1.000000e+00 : f32
    %85 = vector.broadcast %cst_25 : f32 to vector<2x128xf32>
    %86 = arith.addf %85, %84 : vector<2x128xf32>
    %87 = arith.divf %85, %86 : vector<2x128xf32>
    %88 = arith.select %13, %82, %87 : vector<2x128xi1>, vector<2x128xf32>
    %89 = vector.extract_strided_slice %88 {offsets = [0, 0], sizes = [2, 32], strides = [1, 1]} : vector<2x128xf32> to vector<2x32xf32>
    %90 = vector.extract_strided_slice %88 {offsets = [0, 32], sizes = [2, 32], strides = [1, 1]} : vector<2x128xf32> to vector<2x32xf32>
    %91 = vector.extract_strided_slice %88 {offsets = [0, 64], sizes = [2, 32], strides = [1, 1]} : vector<2x128xf32> to vector<2x32xf32>
    %92 = vector.extract_strided_slice %88 {offsets = [0, 96], sizes = [2, 32], strides = [1, 1]} : vector<2x128xf32> to vector<2x32xf32>
    %93 = arith.mulf %90, %55 : vector<2x32xf32>
    %94 = arith.mulf %89, %91 : vector<2x32xf32>
    %95 = arith.addf %93, %94 : vector<2x32xf32>
    %96 = math.tanh %95 : vector<2x32xf32>
    %97 = arith.mulf %92, %96 : vector<2x32xf32>
    %c2_i32 = arith.constant 2 : i32
    %98 = arith.index_cast %c2_i32 : i32 to index
    %c0_26 = arith.constant 0 : index
    %c0_27 = arith.constant 0 : index
    %99 = vector.load %arg1[%98, %c0_26, %c0_27] : memref<8x2x128xf32, #tpu.memory_space<vmem>>, vector<1x2x128xf32>
    %100 = vector.shape_cast %99 : vector<1x2x128xf32> to vector<2x128xf32>
    %cst_28 = arith.constant dense<0.000000e+00> : vector<2x128xf32>
    %101 = tpu.matmul %78, %3, %cst_28 {dimension_numbers = #tpu.dot_dimension_numbers<[1], [0], [0], [1], [0, 0, 1, 1], [], []>} : vector<2x32xf32>, vector<32x128xf32>, vector<2x128xf32> -> vector<2x128xf32>
    %102 = arith.addf %100, %101 : vector<2x128xf32>
    %103 = math.tanh %102 : vector<2x128xf32>
    %104 = arith.negf %102 : vector<2x128xf32>
    %105 = math.exp %104 : vector<2x128xf32>
    %cst_29 = arith.constant 1.000000e+00 : f32
    %106 = vector.broadcast %cst_29 : f32 to vector<2x128xf32>
    %107 = arith.addf %106, %105 : vector<2x128xf32>
    %108 = arith.divf %106, %107 : vector<2x128xf32>
    %109 = arith.select %13, %103, %108 : vector<2x128xi1>, vector<2x128xf32>
    %110 = vector.extract_strided_slice %109 {offsets = [0, 0], sizes = [2, 32], strides = [1, 1]} : vector<2x128xf32> to vector<2x32xf32>
    %111 = vector.extract_strided_slice %109 {offsets = [0, 32], sizes = [2, 32], strides = [1, 1]} : vector<2x128xf32> to vector<2x32xf32>
    %112 = vector.extract_strided_slice %109 {offsets = [0, 64], sizes = [2, 32], strides = [1, 1]} : vector<2x128xf32> to vector<2x32xf32>
    %113 = vector.extract_strided_slice %109 {offsets = [0, 96], sizes = [2, 32], strides = [1, 1]} : vector<2x128xf32> to vector<2x32xf32>
    %114 = arith.mulf %111, %76 : vector<2x32xf32>
    %115 = arith.mulf %110, %112 : vector<2x32xf32>
    %116 = arith.addf %114, %115 : vector<2x32xf32>
    %117 = math.tanh %116 : vector<2x32xf32>
    %118 = arith.mulf %113, %117 : vector<2x32xf32>
    %119 = tpu.concatenate %118, %97 in 1 : vector<2x32xf32>, vector<2x32xf32> -> vector<2x64xf32>
    %cst_30 = arith.constant dense<0.000000e+00> : vector<2x128xf32>
    %120 = tpu.matmul %119, %4, %cst_30 {dimension_numbers = #tpu.dot_dimension_numbers<[1], [0], [0], [1], [0, 0, 1, 1], [], []>} : vector<2x64xf32>, vector<64x128xf32>, vector<2x128xf32> -> vector<2x128xf32>
    %121 = arith.addf %120, %7 : vector<2x128xf32>
    %122 = math.tanh %121 : vector<2x128xf32>
    %123 = arith.negf %121 : vector<2x128xf32>
    %124 = math.exp %123 : vector<2x128xf32>
    %cst_31 = arith.constant 1.000000e+00 : f32
    %125 = vector.broadcast %cst_31 : f32 to vector<2x128xf32>
    %126 = arith.addf %125, %124 : vector<2x128xf32>
    %127 = arith.divf %125, %126 : vector<2x128xf32>
    %128 = arith.select %13, %122, %127 : vector<2x128xi1>, vector<2x128xf32>
    %129 = vector.extract_strided_slice %128 {offsets = [0, 0], sizes = [2, 32], strides = [1, 1]} : vector<2x128xf32> to vector<2x32xf32>
    %130 = vector.extract_strided_slice %128 {offsets = [0, 32], sizes = [2, 32], strides = [1, 1]} : vector<2x128xf32> to vector<2x32xf32>
    %131 = vector.extract_strided_slice %128 {offsets = [0, 64], sizes = [2, 32], strides = [1, 1]} : vector<2x128xf32> to vector<2x32xf32>
    %132 = vector.extract_strided_slice %128 {offsets = [0, 96], sizes = [2, 32], strides = [1, 1]} : vector<2x128xf32> to vector<2x32xf32>
    %133 = arith.mulf %130, %95 : vector<2x32xf32>
    %134 = arith.mulf %129, %131 : vector<2x32xf32>
    %135 = arith.addf %133, %134 : vector<2x32xf32>
    %136 = math.tanh %135 : vector<2x32xf32>
    %137 = arith.mulf %132, %136 : vector<2x32xf32>
    %c3_i32 = arith.constant 3 : i32
    %138 = arith.index_cast %c3_i32 : i32 to index
    %c0_32 = arith.constant 0 : index
    %c0_33 = arith.constant 0 : index
    %139 = vector.load %arg1[%138, %c0_32, %c0_33] : memref<8x2x128xf32, #tpu.memory_space<vmem>>, vector<1x2x128xf32>
    %140 = vector.shape_cast %139 : vector<1x2x128xf32> to vector<2x128xf32>
    %cst_34 = arith.constant dense<0.000000e+00> : vector<2x128xf32>
    %141 = tpu.matmul %118, %3, %cst_34 {dimension_numbers = #tpu.dot_dimension_numbers<[1], [0], [0], [1], [0, 0, 1, 1], [], []>} : vector<2x32xf32>, vector<32x128xf32>, vector<2x128xf32> -> vector<2x128xf32>
    %142 = arith.addf %140, %141 : vector<2x128xf32>
    %143 = math.tanh %142 : vector<2x128xf32>
    %144 = arith.negf %142 : vector<2x128xf32>
    %145 = math.exp %144 : vector<2x128xf32>
    %cst_35 = arith.constant 1.000000e+00 : f32
    %146 = vector.broadcast %cst_35 : f32 to vector<2x128xf32>
    %147 = arith.addf %146, %145 : vector<2x128xf32>
    %148 = arith.divf %146, %147 : vector<2x128xf32>
    %149 = arith.select %13, %143, %148 : vector<2x128xi1>, vector<2x128xf32>
    %150 = vector.extract_strided_slice %149 {offsets = [0, 0], sizes = [2, 32], strides = [1, 1]} : vector<2x128xf32> to vector<2x32xf32>
    %151 = vector.extract_strided_slice %149 {offsets = [0, 32], sizes = [2, 32], strides = [1, 1]} : vector<2x128xf32> to vector<2x32xf32>
    %152 = vector.extract_strided_slice %149 {offsets = [0, 64], sizes = [2, 32], strides = [1, 1]} : vector<2x128xf32> to vector<2x32xf32>
    %153 = vector.extract_strided_slice %149 {offsets = [0, 96], sizes = [2, 32], strides = [1, 1]} : vector<2x128xf32> to vector<2x32xf32>
    %154 = arith.mulf %151, %116 : vector<2x32xf32>
    %155 = arith.mulf %150, %152 : vector<2x32xf32>
    %156 = arith.addf %154, %155 : vector<2x32xf32>
    %157 = math.tanh %156 : vector<2x32xf32>
    %158 = arith.mulf %153, %157 : vector<2x32xf32>
    %159 = tpu.concatenate %158, %137 in 1 : vector<2x32xf32>, vector<2x32xf32> -> vector<2x64xf32>
    %cst_36 = arith.constant dense<0.000000e+00> : vector<2x128xf32>
    %160 = tpu.matmul %159, %4, %cst_36 {dimension_numbers = #tpu.dot_dimension_numbers<[1], [0], [0], [1], [0, 0, 1, 1], [], []>} : vector<2x64xf32>, vector<64x128xf32>, vector<2x128xf32> -> vector<2x128xf32>
    %161 = arith.addf %160, %7 : vector<2x128xf32>
    %162 = math.tanh %161 : vector<2x128xf32>
    %163 = arith.negf %161 : vector<2x128xf32>
    %164 = math.exp %163 : vector<2x128xf32>
    %cst_37 = arith.constant 1.000000e+00 : f32
    %165 = vector.broadcast %cst_37 : f32 to vector<2x128xf32>
    %166 = arith.addf %165, %164 : vector<2x128xf32>
    %167 = arith.divf %165, %166 : vector<2x128xf32>
    %168 = arith.select %13, %162, %167 : vector<2x128xi1>, vector<2x128xf32>
    %169 = vector.extract_strided_slice %168 {offsets = [0, 0], sizes = [2, 32], strides = [1, 1]} : vector<2x128xf32> to vector<2x32xf32>
    %170 = vector.extract_strided_slice %168 {offsets = [0, 32], sizes = [2, 32], strides = [1, 1]} : vector<2x128xf32> to vector<2x32xf32>
    %171 = vector.extract_strided_slice %168 {offsets = [0, 64], sizes = [2, 32], strides = [1, 1]} : vector<2x128xf32> to vector<2x32xf32>
    %172 = vector.extract_strided_slice %168 {offsets = [0, 96], sizes = [2, 32], strides = [1, 1]} : vector<2x128xf32> to vector<2x32xf32>
    %173 = arith.mulf %170, %135 : vector<2x32xf32>
    %174 = arith.mulf %169, %171 : vector<2x32xf32>
    %175 = arith.addf %173, %174 : vector<2x32xf32>
    %176 = math.tanh %175 : vector<2x32xf32>
    %177 = arith.mulf %172, %176 : vector<2x32xf32>
    %c4_i32 = arith.constant 4 : i32
    %178 = arith.index_cast %c4_i32 : i32 to index
    %c0_38 = arith.constant 0 : index
    %c0_39 = arith.constant 0 : index
    %179 = vector.load %arg1[%178, %c0_38, %c0_39] : memref<8x2x128xf32, #tpu.memory_space<vmem>>, vector<1x2x128xf32>
    %180 = vector.shape_cast %179 : vector<1x2x128xf32> to vector<2x128xf32>
    %cst_40 = arith.constant dense<0.000000e+00> : vector<2x128xf32>
    %181 = tpu.matmul %158, %3, %cst_40 {dimension_numbers = #tpu.dot_dimension_numbers<[1], [0], [0], [1], [0, 0, 1, 1], [], []>} : vector<2x32xf32>, vector<32x128xf32>, vector<2x128xf32> -> vector<2x128xf32>
    %182 = arith.addf %180, %181 : vector<2x128xf32>
    %183 = math.tanh %182 : vector<2x128xf32>
    %184 = arith.negf %182 : vector<2x128xf32>
    %185 = math.exp %184 : vector<2x128xf32>
    %cst_41 = arith.constant 1.000000e+00 : f32
    %186 = vector.broadcast %cst_41 : f32 to vector<2x128xf32>
    %187 = arith.addf %186, %185 : vector<2x128xf32>
    %188 = arith.divf %186, %187 : vector<2x128xf32>
    %189 = arith.select %13, %183, %188 : vector<2x128xi1>, vector<2x128xf32>
    %190 = vector.extract_strided_slice %189 {offsets = [0, 0], sizes = [2, 32], strides = [1, 1]} : vector<2x128xf32> to vector<2x32xf32>
    %191 = vector.extract_strided_slice %189 {offsets = [0, 32], sizes = [2, 32], strides = [1, 1]} : vector<2x128xf32> to vector<2x32xf32>
    %192 = vector.extract_strided_slice %189 {offsets = [0, 64], sizes = [2, 32], strides = [1, 1]} : vector<2x128xf32> to vector<2x32xf32>
    %193 = vector.extract_strided_slice %189 {offsets = [0, 96], sizes = [2, 32], strides = [1, 1]} : vector<2x128xf32> to vector<2x32xf32>
    %194 = arith.mulf %191, %156 : vector<2x32xf32>
    %195 = arith.mulf %190, %192 : vector<2x32xf32>
    %196 = arith.addf %194, %195 : vector<2x32xf32>
    %197 = math.tanh %196 : vector<2x32xf32>
    %198 = arith.mulf %193, %197 : vector<2x32xf32>
    %199 = tpu.concatenate %198, %177 in 1 : vector<2x32xf32>, vector<2x32xf32> -> vector<2x64xf32>
    %cst_42 = arith.constant dense<0.000000e+00> : vector<2x128xf32>
    %200 = tpu.matmul %199, %4, %cst_42 {dimension_numbers = #tpu.dot_dimension_numbers<[1], [0], [0], [1], [0, 0, 1, 1], [], []>} : vector<2x64xf32>, vector<64x128xf32>, vector<2x128xf32> -> vector<2x128xf32>
    %201 = arith.addf %200, %7 : vector<2x128xf32>
    %202 = math.tanh %201 : vector<2x128xf32>
    %203 = arith.negf %201 : vector<2x128xf32>
    %204 = math.exp %203 : vector<2x128xf32>
    %cst_43 = arith.constant 1.000000e+00 : f32
    %205 = vector.broadcast %cst_43 : f32 to vector<2x128xf32>
    %206 = arith.addf %205, %204 : vector<2x128xf32>
    %207 = arith.divf %205, %206 : vector<2x128xf32>
    %208 = arith.select %13, %202, %207 : vector<2x128xi1>, vector<2x128xf32>
    %209 = vector.extract_strided_slice %208 {offsets = [0, 0], sizes = [2, 32], strides = [1, 1]} : vector<2x128xf32> to vector<2x32xf32>
    %210 = vector.extract_strided_slice %208 {offsets = [0, 32], sizes = [2, 32], strides = [1, 1]} : vector<2x128xf32> to vector<2x32xf32>
    %211 = vector.extract_strided_slice %208 {offsets = [0, 64], sizes = [2, 32], strides = [1, 1]} : vector<2x128xf32> to vector<2x32xf32>
    %212 = vector.extract_strided_slice %208 {offsets = [0, 96], sizes = [2, 32], strides = [1, 1]} : vector<2x128xf32> to vector<2x32xf32>
    %213 = arith.mulf %210, %175 : vector<2x32xf32>
    %214 = arith.mulf %209, %211 : vector<2x32xf32>
    %215 = arith.addf %213, %214 : vector<2x32xf32>
    %216 = math.tanh %215 : vector<2x32xf32>
    %217 = arith.mulf %212, %216 : vector<2x32xf32>
    %c5_i32 = arith.constant 5 : i32
    %218 = arith.index_cast %c5_i32 : i32 to index
    %c0_44 = arith.constant 0 : index
    %c0_45 = arith.constant 0 : index
    %219 = vector.load %arg1[%218, %c0_44, %c0_45] : memref<8x2x128xf32, #tpu.memory_space<vmem>>, vector<1x2x128xf32>
    %220 = vector.shape_cast %219 : vector<1x2x128xf32> to vector<2x128xf32>
    %cst_46 = arith.constant dense<0.000000e+00> : vector<2x128xf32>
    %221 = tpu.matmul %198, %3, %cst_46 {dimension_numbers = #tpu.dot_dimension_numbers<[1], [0], [0], [1], [0, 0, 1, 1], [], []>} : vector<2x32xf32>, vector<32x128xf32>, vector<2x128xf32> -> vector<2x128xf32>
    %222 = arith.addf %220, %221 : vector<2x128xf32>
    %223 = math.tanh %222 : vector<2x128xf32>
    %224 = arith.negf %222 : vector<2x128xf32>
    %225 = math.exp %224 : vector<2x128xf32>
    %cst_47 = arith.constant 1.000000e+00 : f32
    %226 = vector.broadcast %cst_47 : f32 to vector<2x128xf32>
    %227 = arith.addf %226, %225 : vector<2x128xf32>
    %228 = arith.divf %226, %227 : vector<2x128xf32>
    %229 = arith.select %13, %223, %228 : vector<2x128xi1>, vector<2x128xf32>
    %230 = vector.extract_strided_slice %229 {offsets = [0, 0], sizes = [2, 32], strides = [1, 1]} : vector<2x128xf32> to vector<2x32xf32>
    %231 = vector.extract_strided_slice %229 {offsets = [0, 32], sizes = [2, 32], strides = [1, 1]} : vector<2x128xf32> to vector<2x32xf32>
    %232 = vector.extract_strided_slice %229 {offsets = [0, 64], sizes = [2, 32], strides = [1, 1]} : vector<2x128xf32> to vector<2x32xf32>
    %233 = vector.extract_strided_slice %229 {offsets = [0, 96], sizes = [2, 32], strides = [1, 1]} : vector<2x128xf32> to vector<2x32xf32>
    %234 = arith.mulf %231, %196 : vector<2x32xf32>
    %235 = arith.mulf %230, %232 : vector<2x32xf32>
    %236 = arith.addf %234, %235 : vector<2x32xf32>
    %237 = math.tanh %236 : vector<2x32xf32>
    %238 = arith.mulf %233, %237 : vector<2x32xf32>
    %239 = tpu.concatenate %238, %217 in 1 : vector<2x32xf32>, vector<2x32xf32> -> vector<2x64xf32>
    %cst_48 = arith.constant dense<0.000000e+00> : vector<2x128xf32>
    %240 = tpu.matmul %239, %4, %cst_48 {dimension_numbers = #tpu.dot_dimension_numbers<[1], [0], [0], [1], [0, 0, 1, 1], [], []>} : vector<2x64xf32>, vector<64x128xf32>, vector<2x128xf32> -> vector<2x128xf32>
    %241 = arith.addf %240, %7 : vector<2x128xf32>
    %242 = math.tanh %241 : vector<2x128xf32>
    %243 = arith.negf %241 : vector<2x128xf32>
    %244 = math.exp %243 : vector<2x128xf32>
    %cst_49 = arith.constant 1.000000e+00 : f32
    %245 = vector.broadcast %cst_49 : f32 to vector<2x128xf32>
    %246 = arith.addf %245, %244 : vector<2x128xf32>
    %247 = arith.divf %245, %246 : vector<2x128xf32>
    %248 = arith.select %13, %242, %247 : vector<2x128xi1>, vector<2x128xf32>
    %249 = vector.extract_strided_slice %248 {offsets = [0, 0], sizes = [2, 32], strides = [1, 1]} : vector<2x128xf32> to vector<2x32xf32>
    %250 = vector.extract_strided_slice %248 {offsets = [0, 32], sizes = [2, 32], strides = [1, 1]} : vector<2x128xf32> to vector<2x32xf32>
    %251 = vector.extract_strided_slice %248 {offsets = [0, 64], sizes = [2, 32], strides = [1, 1]} : vector<2x128xf32> to vector<2x32xf32>
    %252 = vector.extract_strided_slice %248 {offsets = [0, 96], sizes = [2, 32], strides = [1, 1]} : vector<2x128xf32> to vector<2x32xf32>
    %253 = arith.mulf %250, %215 : vector<2x32xf32>
    %254 = arith.mulf %249, %251 : vector<2x32xf32>
    %255 = arith.addf %253, %254 : vector<2x32xf32>
    %256 = math.tanh %255 : vector<2x32xf32>
    %257 = arith.mulf %252, %256 : vector<2x32xf32>
    %c6_i32 = arith.constant 6 : i32
    %258 = arith.index_cast %c6_i32 : i32 to index
    %c0_50 = arith.constant 0 : index
    %c0_51 = arith.constant 0 : index
    %259 = vector.load %arg1[%258, %c0_50, %c0_51] : memref<8x2x128xf32, #tpu.memory_space<vmem>>, vector<1x2x128xf32>
    %260 = vector.shape_cast %259 : vector<1x2x128xf32> to vector<2x128xf32>
    %cst_52 = arith.constant dense<0.000000e+00> : vector<2x128xf32>
    %261 = tpu.matmul %238, %3, %cst_52 {dimension_numbers = #tpu.dot_dimension_numbers<[1], [0], [0], [1], [0, 0, 1, 1], [], []>} : vector<2x32xf32>, vector<32x128xf32>, vector<2x128xf32> -> vector<2x128xf32>
    %262 = arith.addf %260, %261 : vector<2x128xf32>
    %263 = math.tanh %262 : vector<2x128xf32>
    %264 = arith.negf %262 : vector<2x128xf32>
    %265 = math.exp %264 : vector<2x128xf32>
    %cst_53 = arith.constant 1.000000e+00 : f32
    %266 = vector.broadcast %cst_53 : f32 to vector<2x128xf32>
    %267 = arith.addf %266, %265 : vector<2x128xf32>
    %268 = arith.divf %266, %267 : vector<2x128xf32>
    %269 = arith.select %13, %263, %268 : vector<2x128xi1>, vector<2x128xf32>
    %270 = vector.extract_strided_slice %269 {offsets = [0, 0], sizes = [2, 32], strides = [1, 1]} : vector<2x128xf32> to vector<2x32xf32>
    %271 = vector.extract_strided_slice %269 {offsets = [0, 32], sizes = [2, 32], strides = [1, 1]} : vector<2x128xf32> to vector<2x32xf32>
    %272 = vector.extract_strided_slice %269 {offsets = [0, 64], sizes = [2, 32], strides = [1, 1]} : vector<2x128xf32> to vector<2x32xf32>
    %273 = vector.extract_strided_slice %269 {offsets = [0, 96], sizes = [2, 32], strides = [1, 1]} : vector<2x128xf32> to vector<2x32xf32>
    %274 = arith.mulf %271, %236 : vector<2x32xf32>
    %275 = arith.mulf %270, %272 : vector<2x32xf32>
    %276 = arith.addf %274, %275 : vector<2x32xf32>
    %277 = math.tanh %276 : vector<2x32xf32>
    %278 = arith.mulf %273, %277 : vector<2x32xf32>
    %279 = tpu.concatenate %278, %257 in 1 : vector<2x32xf32>, vector<2x32xf32> -> vector<2x64xf32>
    %cst_54 = arith.constant dense<0.000000e+00> : vector<2x128xf32>
    %280 = tpu.matmul %279, %4, %cst_54 {dimension_numbers = #tpu.dot_dimension_numbers<[1], [0], [0], [1], [0, 0, 1, 1], [], []>} : vector<2x64xf32>, vector<64x128xf32>, vector<2x128xf32> -> vector<2x128xf32>
    %281 = arith.addf %280, %7 : vector<2x128xf32>
    %282 = math.tanh %281 : vector<2x128xf32>
    %283 = arith.negf %281 : vector<2x128xf32>
    %284 = math.exp %283 : vector<2x128xf32>
    %cst_55 = arith.constant 1.000000e+00 : f32
    %285 = vector.broadcast %cst_55 : f32 to vector<2x128xf32>
    %286 = arith.addf %285, %284 : vector<2x128xf32>
    %287 = arith.divf %285, %286 : vector<2x128xf32>
    %288 = arith.select %13, %282, %287 : vector<2x128xi1>, vector<2x128xf32>
    %289 = vector.extract_strided_slice %288 {offsets = [0, 0], sizes = [2, 32], strides = [1, 1]} : vector<2x128xf32> to vector<2x32xf32>
    %290 = vector.extract_strided_slice %288 {offsets = [0, 32], sizes = [2, 32], strides = [1, 1]} : vector<2x128xf32> to vector<2x32xf32>
    %291 = vector.extract_strided_slice %288 {offsets = [0, 64], sizes = [2, 32], strides = [1, 1]} : vector<2x128xf32> to vector<2x32xf32>
    %292 = vector.extract_strided_slice %288 {offsets = [0, 96], sizes = [2, 32], strides = [1, 1]} : vector<2x128xf32> to vector<2x32xf32>
    %293 = arith.mulf %290, %255 : vector<2x32xf32>
    %294 = arith.mulf %289, %291 : vector<2x32xf32>
    %295 = arith.addf %293, %294 : vector<2x32xf32>
    %296 = math.tanh %295 : vector<2x32xf32>
    %297 = arith.mulf %292, %296 : vector<2x32xf32>
    %c7_i32 = arith.constant 7 : i32
    %298 = arith.index_cast %c7_i32 : i32 to index
    %c0_56 = arith.constant 0 : index
    %c0_57 = arith.constant 0 : index
    %299 = vector.load %arg1[%298, %c0_56, %c0_57] : memref<8x2x128xf32, #tpu.memory_space<vmem>>, vector<1x2x128xf32>
    %300 = vector.shape_cast %299 : vector<1x2x128xf32> to vector<2x128xf32>
    %cst_58 = arith.constant dense<0.000000e+00> : vector<2x128xf32>
    %301 = tpu.matmul %278, %3, %cst_58 {dimension_numbers = #tpu.dot_dimension_numbers<[1], [0], [0], [1], [0, 0, 1, 1], [], []>} : vector<2x32xf32>, vector<32x128xf32>, vector<2x128xf32> -> vector<2x128xf32>
    %302 = arith.addf %300, %301 : vector<2x128xf32>
    %303 = math.tanh %302 : vector<2x128xf32>
    %304 = arith.negf %302 : vector<2x128xf32>
    %305 = math.exp %304 : vector<2x128xf32>
    %cst_59 = arith.constant 1.000000e+00 : f32
    %306 = vector.broadcast %cst_59 : f32 to vector<2x128xf32>
    %307 = arith.addf %306, %305 : vector<2x128xf32>
    %308 = arith.divf %306, %307 : vector<2x128xf32>
    %309 = arith.select %13, %303, %308 : vector<2x128xi1>, vector<2x128xf32>
    %310 = vector.extract_strided_slice %309 {offsets = [0, 0], sizes = [2, 32], strides = [1, 1]} : vector<2x128xf32> to vector<2x32xf32>
    %311 = vector.extract_strided_slice %309 {offsets = [0, 32], sizes = [2, 32], strides = [1, 1]} : vector<2x128xf32> to vector<2x32xf32>
    %312 = vector.extract_strided_slice %309 {offsets = [0, 64], sizes = [2, 32], strides = [1, 1]} : vector<2x128xf32> to vector<2x32xf32>
    %313 = vector.extract_strided_slice %309 {offsets = [0, 96], sizes = [2, 32], strides = [1, 1]} : vector<2x128xf32> to vector<2x32xf32>
    %314 = arith.mulf %311, %276 : vector<2x32xf32>
    %315 = arith.mulf %310, %312 : vector<2x32xf32>
    %316 = arith.addf %314, %315 : vector<2x32xf32>
    %317 = math.tanh %316 : vector<2x32xf32>
    %318 = arith.mulf %313, %317 : vector<2x32xf32>
    %319 = tpu.concatenate %318, %297 in 1 : vector<2x32xf32>, vector<2x32xf32> -> vector<2x64xf32>
    %cst_60 = arith.constant dense<0.000000e+00> : vector<2x128xf32>
    %320 = tpu.matmul %319, %4, %cst_60 {dimension_numbers = #tpu.dot_dimension_numbers<[1], [0], [0], [1], [0, 0, 1, 1], [], []>} : vector<2x64xf32>, vector<64x128xf32>, vector<2x128xf32> -> vector<2x128xf32>
    %321 = arith.addf %320, %7 : vector<2x128xf32>
    %322 = math.tanh %321 : vector<2x128xf32>
    %323 = arith.negf %321 : vector<2x128xf32>
    %324 = math.exp %323 : vector<2x128xf32>
    %cst_61 = arith.constant 1.000000e+00 : f32
    %325 = vector.broadcast %cst_61 : f32 to vector<2x128xf32>
    %326 = arith.addf %325, %324 : vector<2x128xf32>
    %327 = arith.divf %325, %326 : vector<2x128xf32>
    %328 = arith.select %13, %322, %327 : vector<2x128xi1>, vector<2x128xf32>
    %329 = vector.extract_strided_slice %328 {offsets = [0, 0], sizes = [2, 32], strides = [1, 1]} : vector<2x128xf32> to vector<2x32xf32>
    %330 = vector.extract_strided_slice %328 {offsets = [0, 32], sizes = [2, 32], strides = [1, 1]} : vector<2x128xf32> to vector<2x32xf32>
    %331 = vector.extract_strided_slice %328 {offsets = [0, 64], sizes = [2, 32], strides = [1, 1]} : vector<2x128xf32> to vector<2x32xf32>
    %332 = vector.extract_strided_slice %328 {offsets = [0, 96], sizes = [2, 32], strides = [1, 1]} : vector<2x128xf32> to vector<2x32xf32>
    %333 = arith.mulf %330, %295 : vector<2x32xf32>
    %334 = arith.mulf %329, %331 : vector<2x32xf32>
    %335 = arith.addf %333, %334 : vector<2x32xf32>
    %336 = math.tanh %335 : vector<2x32xf32>
    %337 = arith.mulf %332, %336 : vector<2x32xf32>
    %c8_i32 = arith.constant 8 : i32
    %c0_62 = arith.constant 0 : index
    %c0_63 = arith.constant 0 : index
    %338 = vector.load %arg8[%c0_62, %c0_63] : memref<2x32xf32, #tpu.memory_space<vmem>>, vector<2x32xf32>
    tpu.vector_store %arg8[%c0_62, %c0_63], %318 {strides = array<i32>} : memref<2x32xf32, #tpu.memory_space<vmem>>, vector<2x32xf32>,
    %c0_64 = arith.constant 0 : index
    %c0_65 = arith.constant 0 : index
    %339 = vector.load %arg9[%c0_64, %c0_65] : memref<2x32xf32, #tpu.memory_space<vmem>>, vector<2x32xf32>
    tpu.vector_store %arg9[%c0_64, %c0_65], %316 {strides = array<i32>} : memref<2x32xf32, #tpu.memory_space<vmem>>, vector<2x32xf32>,
    %c0_66 = arith.constant 0 : index
    %c0_67 = arith.constant 0 : index
    %340 = vector.load %arg10[%c0_66, %c0_67] : memref<2x32xf32, #tpu.memory_space<vmem>>, vector<2x32xf32>
    tpu.vector_store %arg10[%c0_66, %c0_67], %337 {strides = array<i32>} : memref<2x32xf32, #tpu.memory_space<vmem>>, vector<2x32xf32>,
    %c0_68 = arith.constant 0 : index
    %c0_69 = arith.constant 0 : index
    %341 = vector.load %arg11[%c0_68, %c0_69] : memref<2x32xf32, #tpu.memory_space<vmem>>, vector<2x32xf32>
    tpu.vector_store %arg11[%c0_68, %c0_69], %335 {strides = array<i32>} : memref<2x32xf32, #tpu.memory_space<vmem>>, vector<2x32xf32>,
    %c0_i32_70 = arith.constant 0 : i32
    %342 = arith.cmpi eq, %arg0, %c0_i32_70 : i32
    %343 = arith.extui %342 : i1 to i32
    %c0_i32_71 = arith.constant 0 : i32
    %344 = arith.cmpi ne, %343, %c0_i32_71 : i32
    scf.if %344 {
      %c0_72 = arith.constant 0 : index
      %c0_73 = arith.constant 0 : index
      %345 = vector.load %arg5[%c0_72, %c0_73] : memref<32x1xf32, #tpu.memory_space<vmem>>, vector<32x1xf32>
      %cst_74 = arith.constant dense<0.000000e+00> : vector<2x1xf32>
      %346 = tpu.matmul %337, %345, %cst_74 {dimension_numbers = #tpu.dot_dimension_numbers<[1], [0], [0], [1], [0, 0, 1, 1], [], []>} : vector<2x32xf32>, vector<32x1xf32>, vector<2x1xf32> -> vector<2x1xf32>
      %c0_75 = arith.constant 0 : index
      %c0_76 = arith.constant 0 : index
      %347 = vector.load %arg6[%c0_75, %c0_76] : memref<1x1xf32, #tpu.memory_space<vmem>>, vector<1x1xf32>
      %348 = vector.broadcast %347 : vector<1x1xf32> to vector<2x1xf32>
      %349 = arith.addf %346, %348 : vector<2x1xf32>
      %c0_77 = arith.constant 0 : index
      %c0_78 = arith.constant 0 : index
      %350 = vector.load %arg7[%c0_77, %c0_78] : memref<2x1xf32, #tpu.memory_space<vmem>>, vector<2x1xf32>
      tpu.vector_store %arg7[%c0_77, %c0_78], %349 {strides = array<i32>} : memref<2x1xf32, #tpu.memory_space<vmem>>, vector<2x1xf32>,
    } else {
    }
    return
  }
  func.func @transform_0(%arg0: i32) -> (i32, i32, i32) {
    %c0_i32 = arith.constant 0 : i32
    %c0_i32_0 = arith.constant 0 : i32
    %c0_i32_1 = arith.constant 0 : i32
    return %arg0, %c0_i32, %c0_i32_0 : i32, i32, i32
  }
  func.func @transform_1(%arg0: i32) -> (i32, i32) {
    %c0_i32 = arith.constant 0 : i32
    %c0_i32_0 = arith.constant 0 : i32
    %c0_i32_1 = arith.constant 0 : i32
    return %c0_i32, %c0_i32_0 : i32, i32
  }
  func.func @transform_2(%arg0: i32) -> (i32, i32) {
    %c0_i32 = arith.constant 0 : i32
    %c0_i32_0 = arith.constant 0 : i32
    %c0_i32_1 = arith.constant 0 : i32
    return %c0_i32, %c0_i32_0 : i32, i32
  }
  func.func @transform_3(%arg0: i32) -> (i32, i32) {
    %c0_i32 = arith.constant 0 : i32
    %c0_i32_0 = arith.constant 0 : i32
    %c0_i32_1 = arith.constant 0 : i32
    return %c0_i32, %c0_i32_0 : i32, i32
  }
  func.func @transform_4(%arg0: i32) -> (i32, i32) {
    %c0_i32 = arith.constant 0 : i32
    %c0_i32_0 = arith.constant 0 : i32
    %c0_i32_1 = arith.constant 0 : i32
    return %c0_i32, %c0_i32_0 : i32, i32
  }
  func.func @transform_5(%arg0: i32) -> (i32, i32) {
    %c0_i32 = arith.constant 0 : i32
    %c0_i32_0 = arith.constant 0 : i32
    %c0_i32_1 = arith.constant 0 : i32
    return %c0_i32, %c0_i32_0 : i32, i32
  }
  func.func @transform_6(%arg0: i32) -> (i32, i32) {
    %c0_i32 = arith.constant 0 : i32
    %c0_i32_0 = arith.constant 0 : i32
    %c0_i32_1 = arith.constant 0 : i32
    return %c0_i32, %c0_i32_0 : i32, i32
  }
}

</mosaic_0001>

<bundles_post_ra>
// kernel: liquid_lstm_forward.1
= control target key start
LH: loop header
LB: loop body
LE: loop exit
PB: predicated region body
PF: predicated region fallthrough
CT: control target
= control target key end

     0   :  { %vm29_vm0 = vcmask 254976   ;;  %v2531_v0 = vmov 0.0|0.0   ;;  %vm2532_vm1 = vmmov 0   ;;  %v2533_v4 = vmov 0.0   ;;  %s2534_s30 = smov 64   ;;  %s2535_s7 = smov 32   ;;  %s2999_s1 = inlined_call_operand.vmem [shape: f32[32,128], index: 1, kind: input, shape index: {}]   ;;  %s3000_s0 = inlined_call_operand.vmem [shape: f32[8,2,128], index: 0, kind: input, shape index: {}]   ;;  %s3001_s2 = inlined_call_operand.vmem [shape: f32[64,128], index: 2, kind: input, shape index: {}]   ;;  %s3002_s3 = inlined_call_operand.vmem [shape: f32[1,128], index: 3, kind: input, shape index: {}]   ;;  %s3003_s4 = inlined_call_operand.vmem [shape: f32[32,1], index: 4, kind: input, shape index: {}]   ;;  %s3004_s5 = inlined_call_operand.<no memory space> [shape: f32[1,1], index: 5, kind: input, shape index: {}]   ;;  %s3005_s6 = inlined_call_operand.vmem [shape: f32[2,1], index: 6, kind: output, shape index: {}]  }
   0x1   :  { %2247 = vmatprep.subr.bf16.mxu0 %v2531_v0  ;;  %v34_v1 = vld [vmem:[%s2999_s1] sm:$0xff]  ;;  %v35_v2 = vld [vmem:[%s2999_s1 + $0x8] sm:$0xff]  ;;  %v36_v3 = vld [vmem:[%s2999_s1 + $0x10] sm:$0xff]  ;;  %2004 = vmatprep.mubr.msk.f32.mxu0 %vm2532_vm1, %v2533_v4  ;;  %30 = vst.msk [vmem:[#allocation2] sm:$0x3] %vm29_vm0, %v2533_v4  ;;  %vm63_vm2 = vcmask 261120   ;;  %v53_v15 = vlaneseq }
   0x2   :  { %31 = vst.msk [vmem:[#allocation3] sm:$0x3] %vm29_vm0, %v2533_v4  ;;  %32 = vst.msk [vmem:[#allocation4] sm:$0x3] %vm29_vm0, %v2533_v4  ;;  %v2592_v5 = vpack.c.bf16 %v35_v2, %v34_v1  ;;  %v37_v6 = vld [vmem:[%s2999_s1 + $0x18] sm:$0xff]  ;;  %2253 = vmatprep.subr.bf16.mxu1 %v2531_v0  ;;  %2023 = vmatprep.mubr.msk.f32.mxu1 %vm2532_vm1, %v2533_v4  ;;  %v38_v29 = vld [vmem:[%s3001_s2] sm:$0xff] }
   0x3   :  { %33 = vst.msk [vmem:[#allocation5] sm:$0x3] %vm29_vm0, %v2533_v4  ;;  %v2601_v7 = vpack.c.bf16 %v37_v6, %v36_v3  ;;  %v62_v9 = vld [vmem:[%s3000_s0] sm:$0x3]  ;;  %v54_v17 = vand.u32 127, %v53_v15  ;;  %v39_v30 = vld [vmem:[%s3001_s2 + $0x8] sm:$0xff] }
   0x4   :  { %2249 = vmatpush3.bf16.msra.mxu0 %v2592_v5  ;;  %v40_v31 = vld [vmem:[%s3001_s2 + $0x10] sm:$0xff]  ;;  %v2637_v32 = vpack.c.bf16 %v39_v30, %v38_v29  ;;  %v41_v33 = vld [vmem:[%s3001_s2 + $0x18] sm:$0xff]  ;;  %v42_v35 = vld [vmem:[%s3001_s2 + $0x20] sm:$0xff]  ;;  %vm176_vm6 = vcmask 523264   ;;  %s2536_s22 = smov 96   ;;  %vm1831_vm7 = vcmask 1024  }
   0x5   :  { %2250 = vmatprep.subr.bf16.mxu0 %v2531_v0  ;;  %vm55_vm3 = vcmp.ge.s32.totalorder %v54_v17, 64  ;;  %vm56_vm4 = vcmp.lt.s32.totalorder %v54_v17, 96  ;;  %v2643_v34 = vpack.c.bf16 %v41_v33, %v40_v31  ;;  %v43_v36 = vld [vmem:[%s3001_s2 + $0x28] sm:$0xff]  ;;  %v44_v38 = vld [vmem:[%s3001_s2 + $0x30] sm:$0xff]  ;;  %v45_v39 = vld [vmem:[%s3001_s2 + $0x38] sm:$0xff] }
   0x6   :  { %vm2616_vm5 = vmand %vm55_vm3, %vm56_vm4  ;;  %2255 = vmatpush3.bf16.msra.mxu1 %v2637_v32  ;;  %v2653_v37 = vpack.c.bf16 %v43_v36, %v42_v35  ;;  %v2664_v42 = vpack.c.bf16 %v45_v39, %v44_v38  ;;  %v1842_v48 = vld [vmem:[%s3000_s0 + $0x2] sm:$0x3]  ;;  %v2696_v49 = vld [vmem:[%s3002_s3] ss:$0 sm:$0xff] }
   0x7   :  { %2256 = vmatprep.subr.bf16.mxu1 %v2531_v0  ;;  %v1847_v30 = vld [vmem:[%s3000_s0 + $0x4] sm:$0x3]  ;;  %v1750_v18 = vld [vmem:[%s3003_s4 + $0x10] sm:$0xff] }
   0x8   :  { %2252 = vmatpush3.bf16.msra.mxu0 %v2601_v7  ;;  %v58_v8 = vld [vmem:[#allocation2] sm:$0x3] }
   0x9   :  { %2265 = vmatprep.subr.bf16.mxu0 %v2531_v0  ;;  %v59_v22 = vld [vmem:[#allocation3] sm:$0x3]  ;;  %v60_v41 = vld [vmem:[#allocation4] sm:$0x3] }
   0xa   :  { %2258 = vmatpush3.bf16.msra.mxu1 %v2643_v34 }
   0xb   :  { %2005 = vmatmul.mubr.msk.f32.vlgmr.msra.gmra.mrb[0].mxu0 %vm63_vm2, %v58_v8  ;;  %2259 = vmatprep.subr.bf16.mxu1 %v2531_v0  ;;  %v61_v8 = vld [vmem:[#allocation5] sm:$0x3] }
   0xc   :  { %2267 = vmatpush3.bf16.msra.mxu0 %v2592_v5  ;;  %2034 = vmatprep.mubr.msk.f32.mxu0 %vm2532_vm1, %v2533_v4 }
   0xd   :  { %2268 = vmatprep.subr.bf16.mxu0 %v2531_v0 }
   0xe   :  { %2261 = vmatpush3.bf16.msra.mxu1 %v2653_v37 }
   0xf   :  { %2262 = vmatprep.subr.bf16.mxu1 %v2531_v0 }
  0x10   :  { %2270 = vmatpush3.bf16.msra.mxu0 %v2601_v7 }
  0x11   :  { %2271 = vmatprep.subr.bf16.mxu0 %v2531_v0 }
  0x12   :  { %2264 = vmatpush3.bf16.msra.mxu1 %v2664_v42 }
  0x13   :  { %2283 = vmatprep.subr.bf16.mxu1 %v2531_v0 }
  0xde   :  { %v133_v10 = vpop.f32.mrb[0].mxu0 }
  0xdf   :  { %v137_v11 = vadd.f32 %v133_v10, %v62_v9  ;;  %v2006_v12 = vpop.f32.mrb[1].mxu0 }
  0xe1   :  { %v1839_v13 = vmul.f32 -1.442695, %v137_v11 }
  0xe3   :  { %2403 = vpow2.f32 %v1839_v13 }
  0xe4   :  { %2405 = vtanh.f32 %v137_v11 }
  0xed   :  { %v2404_v14 = vpop.eup %2403 }
  0xee   :  { %v142_v16 = vadd.f32 1.0, %v2404_v14  ;;  %v2406_v19 = vpop.eup %2405 }
  0xf0   :  { %2407 = vrcp.f32 %v142_v16 }
  0xfa   :  { %v2408_v20 = vpop.eup %2407 }
  0xfb   :  { %v145_v21 = vsel %vm2616_vm5, %v2406_v19, %v2408_v20 }
  0xfc   :  { %152 = vrot.lane.b32.xlu0 %v145_v21, %s2534_s30 }
 0x100   :  { %147 = vrot.lane.b32.xlu0 %v59_v22, %s2535_s7 }
 0x16e   :  { %v153_v23 = vpop.permute.xlu0 %152 }
 0x16f   :  { %v155_v24 = vmul.f32 %v153_v23, %v145_v21 }
 0x171   :  { %157 = vrot.lane.b32.xlu1 %v155_v24, %s2535_s7 }
 0x172   :  { %v148_v25 = vpop.permute.xlu0 %147 }
 0x173   :  { %v150_v26 = vmul.f32 %v148_v25, %v145_v21 }
 0x1e3   :  { %v158_v27 = vpop.permute.xlu1 %157 }
 0x1e4   :  { %v2625_v28 = vadd.f32 %v158_v27, %v150_v26 }
 0x1e6   :  { %2409 = vtanh.f32 %v2625_v28 }
 0x1f0   :  { %v2410_v40 = vpop.eup %2409 }
 0x1f1   :  { %163 = vrot.lane.b32.xlu1 %v2410_v40, %s2534_s30 }
 0x1f5   :  { %172 = vrot.lane.b32.xlu1 %v60_v41, %s2535_s7 }
 0x263   :  { %v164_v43 = vpop.permute.xlu1 %163 }
 0x264   :  { %v166_v44 = vmul.f32 %v164_v43, %v145_v21 }
 0x266   :  { %168 = vrot.lane.b32.xlu0 %v166_v44, %s2535_s7 }
 0x267   :  { %v173_v45 = vpop.permute.xlu1 %172 }
 0x2d8   :  { %v169_v46 = vpop.permute.xlu0 %168 }
 0x2d9   :  { %v175_v47 = vsel %vm63_vm2, %v169_v46, %v173_v45  ;;  %2035 = vmatmul.mubr.msk.f32.vlgmr.msra.gmra.mrb[2].mxu0 %vm63_vm2, %v169_v46 }
 0x2da   :  { %2024 = vmatmul.mubr.msk.f32.vlgmr.msra.gmra.mrb[0].mxu1 %vm176_vm6, %v175_v47  ;;  %2273 = vmatpush3.bf16.msra.mxu0 %v2637_v32 }
 0x2db   :  { %2274 = vmatprep.subr.bf16.mxu0 %v2531_v0  ;;  %2285 = vmatpush3.bf16.msra.mxu1 %v2592_v5 }
 0x2dc   :  { %2286 = vmatprep.subr.bf16.mxu1 %v2531_v0  ;;  %2064 = vmatprep.mubr.msk.f32.mxu1 %vm2532_vm1, %v2533_v4 }
 0x2dd   :  { %2053 = vmatprep.mubr.msk.f32.mxu0 %vm2532_vm1, %v2533_v4 }
 0x2de   :  { %2276 = vmatpush3.bf16.msra.mxu0 %v2643_v34 }
 0x2df   :  { %2277 = vmatprep.subr.bf16.mxu0 %v2531_v0  ;;  %2288 = vmatpush3.bf16.msra.mxu1 %v2601_v7 }
 0x2e0   :  { %2289 = vmatprep.subr.bf16.mxu1 %v2531_v0 }
 0x2e2   :  { %2279 = vmatpush3.bf16.msra.mxu0 %v2653_v37 }
 0x2e3   :  { %2280 = vmatprep.subr.bf16.mxu0 %v2531_v0 }
 0x2e6   :  { %2282 = vmatpush3.bf16.msra.mxu0 %v2664_v42 }
 0x2e7   :  { %2301 = vmatprep.subr.bf16.mxu0 %v2531_v0 }
 0x3ac   :  { %v349_v50 = vpop.f32.mrb[2].mxu0 }
 0x3ad   :  { %v353_v51 = vadd.f32 %v1842_v48, %v349_v50  ;;  %v246_v52 = vpop.f32.mrb[0].mxu1  ;;  %v2036_v53 = vpop.f32.mrb[3].mxu0 }
 0x3ae   :  { %v247_v54 = vadd.f32 %v2696_v49, %v246_v52  ;;  %v2025_v55 = vpop.f32.mrb[1].mxu1 }
 0x3af   :  { %v1844_v56 = vmul.f32 -1.442695, %v353_v51 }
 0x3b0   :  { %v1841_v57 = vmul.f32 -1.442695, %v247_v54 }
 0x3b1   :  { %2411 = vpow2.f32 %v1844_v56 }
 0x3b2   :  { %2413 = vpow2.f32 %v1841_v57 }
 0x3b3   :  { %2415 = vtanh.f32 %v353_v51 }
 0x3b4   :  { %2417 = vtanh.f32 %v247_v54 }
 0x3bb   :  { %v2412_v58 = vpop.eup %2411 }
 0x3bc   :  { %v2414_v59 = vpop.eup %2413  ;;  %v358_v60 = vadd.f32 1.0, %v2412_v58 }
 0x3bd   :  { %v254_v61 = vadd.f32 1.0, %v2414_v59  ;;  %v2416_v62 = vpop.eup %2415 }
 0x3be   :  { %2419 = vrcp.f32 %v358_v60  ;;  %v2418_v63 = vpop.eup %2417 }
 0x3bf   :  { %2421 = vrcp.f32 %v254_v61 }
 0x3c8   :  { %v2420_v1 = vpop.eup %2419 }
 0x3c9   :  { %v2422_v2 = vpop.eup %2421  ;;  %v361_v3 = vsel %vm2616_vm5, %v2416_v62, %v2420_v1 }
 0x3ca   :  { %364 = vrot.lane.b32.xlu1 %v361_v3, %s2534_s30  ;;  %v257_v6 = vsel %vm2616_vm5, %v2418_v63, %v2422_v2  ;;  %v362_v14 = vmul.f32 %v361_v3, %v2625_v28 }
 0x3cb   :  { %264 = vrot.lane.b32.xlu0 %v257_v6, %s2534_s30 }
 0x3cf   :  { %259 = vrot.lane.b32.xlu0 %v61_v8, %s2535_s7 }
 0x43c   :  { %v365_v9 = vpop.permute.xlu1 %364 }
 0x43d   :  { %v367_v10 = vmul.f32 %v365_v9, %v361_v3  ;;  %v265_v11 = vpop.permute.xlu0 %264 }
 0x43e   :  { %v267_v12 = vmul.f32 %v265_v11, %v257_v6 }
 0x43f   :  { %369 = vrot.lane.b32.xlu0 %v367_v10, %s2535_s7 }
 0x440   :  { %269 = vrot.lane.b32.xlu1 %v267_v12, %s2535_s7 }
 0x441   :  { %v260_v13 = vpop.permute.xlu0 %259 }
 0x442   :  { %v262_v15 = vmul.f32 %v260_v13, %v257_v6  ;;  %v1852_v13 = vld [vmem:[%s3000_s0 + $0x6] sm:$0x3] }
 0x4b1   :  { %v370_v16 = vpop.permute.xlu0 %369 }
 0x4b2   :  { %v2709_v17 = vadd.f32 %v370_v16, %v362_v14  ;;  %v270_v19 = vpop.permute.xlu1 %269 }
 0x4b3   :  { %v2711_v20 = vadd.f32 %v270_v19, %v262_v15 }
 0x4b4   :  { %2423 = vtanh.f32 %v2709_v17 }
 0x4b5   :  { %2425 = vtanh.f32 %v2711_v20 }
 0x4be   :  { %v2424_v21 = vpop.eup %2423 }
 0x4bf   :  { %v2426_v22 = vpop.eup %2425  ;;  %375 = vrot.lane.b32.xlu0 %v2424_v21, %s2534_s30 }
 0x4c0   :  { %275 = vrot.lane.b32.xlu1 %v2426_v22, %s2534_s30 }
 0x531   :  { %v376_v23 = vpop.permute.xlu0 %375 }
 0x532   :  { %v378_v24 = vmul.f32 %v376_v23, %v361_v3  ;;  %v276_v25 = vpop.permute.xlu1 %275 }
 0x533   :  { %v278_v26 = vmul.f32 %v276_v25, %v257_v6 }
 0x534   :  { %380 = vrot.lane.b32.xlu1 %v378_v24, %s2535_s7 }
 0x535   :  { %384 = vrot.lane.b32.xlu0 %v278_v26, %s2534_s30 }
 0x5a6   :  { %v381_v27 = vpop.permute.xlu1 %380 }
 0x5a7   :  { %v385_v28 = vpop.permute.xlu0 %384  ;;  %2065 = vmatmul.mubr.msk.f32.vlgmr.msra.gmra.mrb[2].mxu1 %vm63_vm2, %v381_v27 }
 0x5a8   :  { %v387_v29 = vsel %vm63_vm2, %v381_v27, %v385_v28  ;;  %2291 = vmatpush3.bf16.msra.mxu1 %v2637_v32  ;;  %2083 = vmatprep.mubr.msk.f32.mxu1 %vm2532_vm1, %v2533_v4 }
 0x5a9   :  { %2054 = vmatmul.mubr.msk.f32.vlgmr.msra.gmra.mrb[4].mxu0 %vm176_vm6, %v387_v29  ;;  %2292 = vmatprep.subr.bf16.mxu1 %v2531_v0 }
 0x5aa   :  { %2303 = vmatpush3.bf16.msra.mxu0 %v2592_v5  ;;  %2094 = vmatprep.mubr.msk.f32.mxu0 %vm2532_vm1, %v2533_v4 }
 0x5ab   :  { %2304 = vmatprep.subr.bf16.mxu0 %v2531_v0 }
 0x5ac   :  { %2294 = vmatpush3.bf16.msra.mxu1 %v2643_v34 }
 0x5ad   :  { %2295 = vmatprep.subr.bf16.mxu1 %v2531_v0 }
 0x5ae   :  { %2306 = vmatpush3.bf16.msra.mxu0 %v2601_v7 }
 0x5af   :  { %2307 = vmatprep.subr.bf16.mxu0 %v2531_v0 }
 0x5b0   :  { %2297 = vmatpush3.bf16.msra.mxu1 %v2653_v37 }
 0x5b1   :  { %2298 = vmatprep.subr.bf16.mxu1 %v2531_v0 }
 0x5b4   :  { %2300 = vmatpush3.bf16.msra.mxu1 %v2664_v42 }
 0x5b5   :  { %2319 = vmatprep.subr.bf16.mxu1 %v2531_v0 }
 0x67a   :  { %v556_v31 = vpop.f32.mrb[2].mxu1 }
 0x67b   :  { %v560_v33 = vadd.f32 %v1847_v30, %v556_v31  ;;  %v2066_v35 = vpop.f32.mrb[3].mxu1 }
 0x67c   :  { %v457_v36 = vpop.f32.mrb[4].mxu0 }
 0x67d   :  { %v1849_v38 = vmul.f32 -1.442695, %v560_v33  ;;  %v458_v39 = vadd.f32 %v2696_v49, %v457_v36  ;;  %v2055_v40 = vpop.f32.mrb[5].mxu0 }
 0x67f   :  { %2427 = vpow2.f32 %v1849_v38  ;;  %v1846_v41 = vmul.f32 -1.442695, %v458_v39 }
 0x681   :  { %2429 = vpow2.f32 %v1846_v41 }
 0x682   :  { %2431 = vtanh.f32 %v560_v33 }
 0x689   :  { %v2428_v43 = vpop.eup %2427 }
 0x68a   :  { %v565_v44 = vadd.f32 1.0, %v2428_v43 }
 0x68b   :  { %v2430_v45 = vpop.eup %2429 }
 0x68c   :  { %2433 = vrcp.f32 %v565_v44  ;;  %v465_v46 = vadd.f32 1.0, %v2430_v45  ;;  %v2432_v47 = vpop.eup %2431 }
 0x68d   :  { %2435 = vtanh.f32 %v458_v39 }
 0x68e   :  { %2437 = vrcp.f32 %v465_v46 }
 0x696   :  { %v2434_v48 = vpop.eup %2433 }
 0x697   :  { %v2436_v50 = vpop.eup %2435  ;;  %v568_v51 = vsel %vm2616_vm5, %v2432_v47, %v2434_v48 }
 0x698   :  { %v2438_v52 = vpop.eup %2437  ;;  %571 = vrot.lane.b32.xlu0 %v568_v51, %s2534_s30  ;;  %v569_v58 = vmul.f32 %v568_v51, %v2709_v17 }
 0x699   :  { %v468_v53 = vsel %vm2616_vm5, %v2436_v50, %v2438_v52 }
 0x69a   :  { %471 = vrot.lane.b32.xlu1 %v468_v53, %s2534_s30  ;;  %v469_v61 = vmul.f32 %v468_v53, %v2711_v20 }
 0x70a   :  { %v572_v54 = vpop.permute.xlu0 %571 }
 0x70b   :  { %v574_v55 = vmul.f32 %v572_v54, %v568_v51 }
 0x70c   :  { %v472_v56 = vpop.permute.xlu1 %471 }
 0x70d   :  { %v474_v57 = vmul.f32 %v472_v56, %v468_v53  ;;  %576 = vrot.lane.b32.xlu0 %v574_v55, %s2535_s7 }
 0x70f   :  { %476 = vrot.lane.b32.xlu1 %v474_v57, %s2535_s7  ;;  %v1857_v57 = vld [vmem:[%s3000_s0 + $0x8] sm:$0x3] }
 0x77f   :  { %v577_v59 = vpop.permute.xlu0 %576 }
 0x780   :  { %v2751_v60 = vadd.f32 %v577_v59, %v569_v58 }
 0x781   :  { %v477_v62 = vpop.permute.xlu1 %476 }
 0x782   :  { %2439 = vtanh.f32 %v2751_v60  ;;  %v2755_v63 = vadd.f32 %v477_v62, %v469_v61 }
 0x784   :  { %2441 = vtanh.f32 %v2755_v63 }
 0x78c   :  { %v2440_v1 = vpop.eup %2439 }
 0x78d   :  { %582 = vrot.lane.b32.xlu0 %v2440_v1, %s2534_s30 }
 0x78e   :  { %v2442_v2 = vpop.eup %2441 }
 0x78f   :  { %482 = vrot.lane.b32.xlu1 %v2442_v2, %s2534_s30 }
 0x7ff   :  { %v583_v3 = vpop.permute.xlu0 %582 }
 0x800   :  { %v585_v6 = vmul.f32 %v583_v3, %v568_v51 }
 0x801   :  { %v483_v8 = vpop.permute.xlu1 %482 }
 0x802   :  { %v485_v9 = vmul.f32 %v483_v8, %v468_v53  ;;  %587 = vrot.lane.b32.xlu1 %v585_v6, %s2535_s7 }
 0x804   :  { %591 = vrot.lane.b32.xlu0 %v485_v9, %s2534_s30 }
 0x874   :  { %v588_v10 = vpop.permute.xlu1 %587 }
 0x875   :  { %2095 = vmatmul.mubr.msk.f32.vlgmr.msra.gmra.mrb[6].mxu0 %vm63_vm2, %v588_v10 }
 0x876   :  { %v592_v11 = vpop.permute.xlu0 %591  ;;  %2309 = vmatpush3.bf16.msra.mxu0 %v2637_v32  ;;  %2113 = vmatprep.mubr.msk.f32.mxu0 %vm2532_vm1, %v2533_v4 }
 0x877   :  { %v594_v12 = vsel %vm63_vm2, %v588_v10, %v592_v11  ;;  %2310 = vmatprep.subr.bf16.mxu0 %v2531_v0 }
 0x878   :  { %2084 = vmatmul.mubr.msk.f32.vlgmr.msra.gmra.mrb[4].mxu1 %vm176_vm6, %v594_v12 }
 0x879   :  { %2321 = vmatpush3.bf16.msra.mxu1 %v2592_v5  ;;  %2124 = vmatprep.mubr.msk.f32.mxu1 %vm2532_vm1, %v2533_v4 }
 0x87a   :  { %2312 = vmatpush3.bf16.msra.mxu0 %v2643_v34  ;;  %2322 = vmatprep.subr.bf16.mxu1 %v2531_v0 }
 0x87b   :  { %2313 = vmatprep.subr.bf16.mxu0 %v2531_v0 }
 0x87d   :  { %2324 = vmatpush3.bf16.msra.mxu1 %v2601_v7 }
 0x87e   :  { %2315 = vmatpush3.bf16.msra.mxu0 %v2653_v37  ;;  %2325 = vmatprep.subr.bf16.mxu1 %v2531_v0 }
 0x87f   :  { %2316 = vmatprep.subr.bf16.mxu0 %v2531_v0 }
 0x882   :  { %2318 = vmatpush3.bf16.msra.mxu0 %v2664_v42 }
 0x883   :  { %2337 = vmatprep.subr.bf16.mxu0 %v2531_v0 }
 0x948   :  { %v763_v14 = vpop.f32.mrb[6].mxu0 }
 0x949   :  { %v767_v15 = vadd.f32 %v1852_v13, %v763_v14  ;;  %v2096_v16 = vpop.f32.mrb[7].mxu0 }
 0x94b   :  { %v1854_v17 = vmul.f32 -1.442695, %v767_v15  ;;  %v664_v19 = vpop.f32.mrb[4].mxu1 }
 0x94c   :  { %v665_v20 = vadd.f32 %v2696_v49, %v664_v19  ;;  %v2085_v21 = vpop.f32.mrb[5].mxu1 }
 0x94d   :  { %2443 = vpow2.f32 %v1854_v17 }
 0x94e   :  { %v1851_v22 = vmul.f32 -1.442695, %v665_v20 }
 0x950   :  { %2445 = vpow2.f32 %v1851_v22 }
 0x951   :  { %2447 = vtanh.f32 %v767_v15 }
 0x957   :  { %v2444_v23 = vpop.eup %2443 }
 0x958   :  { %v772_v24 = vadd.f32 1.0, %v2444_v23 }
 0x95a   :  { %v2446_v25 = vpop.eup %2445  ;;  %2449 = vrcp.f32 %v772_v24 }
 0x95b   :  { %v672_v26 = vadd.f32 1.0, %v2446_v25  ;;  %2451 = vtanh.f32 %v665_v20  ;;  %v2448_v27 = vpop.eup %2447 }
 0x95d   :  { %2453 = vrcp.f32 %v672_v26 }
 0x964   :  { %v2450_v28 = vpop.eup %2449 }
 0x965   :  { %v775_v29 = vsel %vm2616_vm5, %v2448_v27, %v2450_v28  ;;  %v2452_v30 = vpop.eup %2451 }
 0x966   :  { %778 = vrot.lane.b32.xlu0 %v775_v29, %s2534_s30  ;;  %v776_v40 = vmul.f32 %v775_v29, %v2751_v60 }
 0x967   :  { %v2454_v31 = vpop.eup %2453 }
 0x968   :  { %v675_v33 = vsel %vm2616_vm5, %v2452_v30, %v2454_v31 }
 0x969   :  { %678 = vrot.lane.b32.xlu1 %v675_v33, %s2534_s30  ;;  %v676_v44 = vmul.f32 %v675_v33, %v2755_v63 }
 0x9d8   :  { %v779_v35 = vpop.permute.xlu0 %778 }
 0x9d9   :  { %v781_v36 = vmul.f32 %v779_v35, %v775_v29 }
 0x9db   :  { %v679_v38 = vpop.permute.xlu1 %678  ;;  %783 = vrot.lane.b32.xlu0 %v781_v36, %s2535_s7 }
 0x9dc   :  { %v681_v39 = vmul.f32 %v679_v38, %v675_v33 }
 0x9de   :  { %683 = vrot.lane.b32.xlu1 %v681_v39, %s2535_s7  ;;  %v1862_v39 = vld [vmem:[%s3000_s0 + $0xa] sm:$0x3] }
 0xa4d   :  { %v784_v41 = vpop.permute.xlu0 %783 }
 0xa4e   :  { %v2794_v43 = vadd.f32 %v784_v41, %v776_v40 }
 0xa50   :  { %2455 = vtanh.f32 %v2794_v43  ;;  %v684_v45 = vpop.permute.xlu1 %683 }
 0xa51   :  { %v2798_v46 = vadd.f32 %v684_v45, %v676_v44 }
 0xa53   :  { %2457 = vtanh.f32 %v2798_v46 }
 0xa5a   :  { %v2456_v47 = vpop.eup %2455 }
 0xa5b   :  { %789 = vrot.lane.b32.xlu0 %v2456_v47, %s2534_s30 }
 0xa5d   :  { %v2458_v48 = vpop.eup %2457 }
 0xa5e   :  { %689 = vrot.lane.b32.xlu1 %v2458_v48, %s2534_s30 }
 0xacd   :  { %v790_v50 = vpop.permute.xlu0 %789 }
 0xace   :  { %v792_v51 = vmul.f32 %v790_v50, %v775_v29 }
 0xad0   :  { %v690_v52 = vpop.permute.xlu1 %689  ;;  %794 = vrot.lane.b32.xlu1 %v792_v51, %s2535_s7 }
 0xad1   :  { %v692_v53 = vmul.f32 %v690_v52, %v675_v33 }
 0xad3   :  { %798 = vrot.lane.b32.xlu0 %v692_v53, %s2534_s30 }
 0xb42   :  { %v795_v54 = vpop.permute.xlu1 %794 }
 0xb43   :  { %2125 = vmatmul.mubr.msk.f32.vlgmr.msra.gmra.mrb[6].mxu1 %vm63_vm2, %v795_v54 }
 0xb44   :  { %2327 = vmatpush3.bf16.msra.mxu1 %v2637_v32  ;;  %2143 = vmatprep.mubr.msk.f32.mxu1 %vm2532_vm1, %v2533_v4 }
 0xb45   :  { %v799_v55 = vpop.permute.xlu0 %798  ;;  %2328 = vmatprep.subr.bf16.mxu1 %v2531_v0 }
 0xb46   :  { %v801_v56 = vsel %vm63_vm2, %v795_v54, %v799_v55 }
 0xb47   :  { %2114 = vmatmul.mubr.msk.f32.vlgmr.msra.gmra.mrb[8].mxu0 %vm176_vm6, %v801_v56 }
 0xb48   :  { %2339 = vmatpush3.bf16.msra.mxu0 %v2592_v5  ;;  %2330 = vmatpush3.bf16.msra.mxu1 %v2643_v34 }
 0xb49   :  { %2340 = vmatprep.subr.bf16.mxu0 %v2531_v0  ;;  %2331 = vmatprep.subr.bf16.mxu1 %v2531_v0 }
 0xb4a   :  { %2154 = vmatprep.mubr.msk.f32.mxu0 %vm2532_vm1, %v2533_v4 }
 0xb4c   :  { %2342 = vmatpush3.bf16.msra.mxu0 %v2601_v7  ;;  %2333 = vmatpush3.bf16.msra.mxu1 %v2653_v37 }
 0xb4d   :  { %2334 = vmatprep.subr.bf16.mxu1 %v2531_v0  ;;  %2343 = vmatprep.subr.bf16.mxu0 %v2531_v0 }
 0xb50   :  { %2336 = vmatpush3.bf16.msra.mxu1 %v2664_v42 }
 0xb51   :  { %2355 = vmatprep.subr.bf16.mxu1 %v2531_v0 }
 0xc16   :  { %v970_v58 = vpop.f32.mrb[6].mxu1 }
 0xc17   :  { %v974_v59 = vadd.f32 %v1857_v57, %v970_v58  ;;  %v2126_v60 = vpop.f32.mrb[7].mxu1 }
 0xc19   :  { %v1859_v61 = vmul.f32 -1.442695, %v974_v59 }
 0xc1a   :  { %v871_v62 = vpop.f32.mrb[8].mxu0 }
 0xc1b   :  { %2459 = vpow2.f32 %v1859_v61  ;;  %v872_v63 = vadd.f32 %v2696_v49, %v871_v62  ;;  %v2115_v1 = vpop.f32.mrb[9].mxu0 }
 0xc1d   :  { %v1856_v2 = vmul.f32 -1.442695, %v872_v63 }
 0xc1f   :  { %2461 = vpow2.f32 %v1856_v2 }
 0xc20   :  { %2463 = vtanh.f32 %v974_v59 }
 0xc25   :  { %v2460_v3 = vpop.eup %2459 }
 0xc26   :  { %v979_v6 = vadd.f32 1.0, %v2460_v3 }
 0xc28   :  { %2465 = vrcp.f32 %v979_v6 }
 0xc29   :  { %v2462_v8 = vpop.eup %2461  ;;  %2467 = vtanh.f32 %v872_v63 }
 0xc2a   :  { %v879_v9 = vadd.f32 1.0, %v2462_v8  ;;  %v2464_v10 = vpop.eup %2463 }
 0xc2c   :  { %2469 = vrcp.f32 %v879_v9 }
 0xc32   :  { %v2466_v11 = vpop.eup %2465 }
 0xc33   :  { %v982_v12 = vsel %vm2616_vm5, %v2464_v10, %v2466_v11  ;;  %v2468_v13 = vpop.eup %2467 }
 0xc34   :  { %985 = vrot.lane.b32.xlu0 %v982_v12, %s2534_s30  ;;  %v983_v21 = vmul.f32 %v982_v12, %v2794_v43 }
 0xc36   :  { %v2470_v14 = vpop.eup %2469 }
 0xc37   :  { %v882_v15 = vsel %vm2616_vm5, %v2468_v13, %v2470_v14 }
 0xc38   :  { %885 = vrot.lane.b32.xlu1 %v882_v15, %s2534_s30  ;;  %v883_v24 = vmul.f32 %v882_v15, %v2798_v46 }
 0xca6   :  { %v986_v16 = vpop.permute.xlu0 %985 }
 0xca7   :  { %v988_v17 = vmul.f32 %v986_v16, %v982_v12 }
 0xca9   :  { %990 = vrot.lane.b32.xlu0 %v988_v17, %s2535_s7 }
 0xcaa   :  { %v886_v19 = vpop.permute.xlu1 %885 }
 0xcab   :  { %v888_v20 = vmul.f32 %v886_v19, %v882_v15 }
 0xcad   :  { %890 = vrot.lane.b32.xlu1 %v888_v20, %s2535_s7 }
 0xd1b   :  { %v991_v22 = vpop.permute.xlu0 %990 }
 0xd1c   :  { %v2837_v23 = vadd.f32 %v991_v22, %v983_v21 }
 0xd1e   :  { %2471 = vtanh.f32 %v2837_v23 }
 0xd1f   :  { %v891_v25 = vpop.permute.xlu1 %890 }
 0xd20   :  { %v2841_v26 = vadd.f32 %v891_v25, %v883_v24 }
 0xd22   :  { %2473 = vtanh.f32 %v2841_v26 }
 0xd28   :  { %v2472_v27 = vpop.eup %2471 }
 0xd29   :  { %996 = vrot.lane.b32.xlu0 %v2472_v27, %s2534_s30 }
 0xd2c   :  { %v2474_v28 = vpop.eup %2473 }
 0xd2d   :  { %896 = vrot.lane.b32.xlu1 %v2474_v28, %s2534_s30 }
 0xd9b   :  { %v997_v29 = vpop.permute.xlu0 %996 }
 0xd9c   :  { %v999_v30 = vmul.f32 %v997_v29, %v982_v12 }
 0xd9e   :  { %1001 = vrot.lane.b32.xlu1 %v999_v30, %s2535_s7 }
 0xd9f   :  { %v897_v31 = vpop.permute.xlu1 %896 }
 0xda0   :  { %v899_v33 = vmul.f32 %v897_v31, %v882_v15 }
 0xda2   :  { %1005 = vrot.lane.b32.xlu0 %v899_v33, %s2534_s30 }
 0xe10   :  { %v1002_v35 = vpop.permute.xlu1 %1001 }
 0xe11   :  { %2155 = vmatmul.mubr.msk.f32.vlgmr.msra.gmra.mrb[10].mxu0 %vm63_vm2, %v1002_v35 }
 0xe12   :  { %2345 = vmatpush3.bf16.msra.mxu0 %v2637_v32  ;;  %2173 = vmatprep.mubr.msk.f32.mxu0 %vm2532_vm1, %v2533_v4 }
 0xe13   :  { %2346 = vmatprep.subr.bf16.mxu0 %v2531_v0 }
 0xe14   :  { %v1006_v36 = vpop.permute.xlu0 %1005 }
 0xe15   :  { %v1008_v38 = vsel %vm63_vm2, %v1002_v35, %v1006_v36 }
 0xe16   :  { %2144 = vmatmul.mubr.msk.f32.vlgmr.msra.gmra.mrb[8].mxu1 %vm176_vm6, %v1008_v38  ;;  %2348 = vmatpush3.bf16.msra.mxu0 %v2643_v34 }
 0xe17   :  { %2357 = vmatpush3.bf16.msra.mxu1 %v2592_v5  ;;  %2349 = vmatprep.subr.bf16.mxu0 %v2531_v0 }
 0xe18   :  { %2358 = vmatprep.subr.bf16.mxu1 %v2531_v0  ;;  %2184 = vmatprep.mubr.msk.f32.mxu1 %vm2532_vm1, %v2533_v4 }
 0xe1a   :  { %2351 = vmatpush3.bf16.msra.mxu0 %v2653_v37 }
 0xe1b   :  { %2360 = vmatpush3.bf16.msra.mxu1 %v2601_v7  ;;  %2352 = vmatprep.subr.bf16.mxu0 %v2531_v0 }
 0xe1c   :  { %2361 = vmatprep.subr.bf16.mxu1 %v2531_v0 }
 0xe1e   :  { %2354 = vmatpush3.bf16.msra.mxu0 %v2664_v42 }
 0xe1f   :  { %2373 = vmatprep.subr.bf16.mxu0 %v2531_v0 }
 0xee4   :  { %v1177_v40 = vpop.f32.mrb[10].mxu0 }
 0xee5   :  { %v1181_v41 = vadd.f32 %v1862_v39, %v1177_v40  ;;  %v2156_v43 = vpop.f32.mrb[11].mxu0 }
 0xee7   :  { %v1864_v44 = vmul.f32 -1.442695, %v1181_v41 }
 0xee9   :  { %2475 = vpow2.f32 %v1864_v44  ;;  %v1078_v45 = vpop.f32.mrb[8].mxu1 }
 0xeea   :  { %v1079_v46 = vadd.f32 %v2696_v49, %v1078_v45  ;;  %v2145_v47 = vpop.f32.mrb[9].mxu1 }
 0xeec   :  { %v1861_v48 = vmul.f32 -1.442695, %v1079_v46 }
 0xeee   :  { %2477 = vpow2.f32 %v1861_v48 }
 0xeef   :  { %2479 = vtanh.f32 %v1181_v41 }
 0xef3   :  { %v2476_v50 = vpop.eup %2475 }
 0xef4   :  { %v1186_v51 = vadd.f32 1.0, %v2476_v50 }
 0xef6   :  { %2481 = vrcp.f32 %v1186_v51 }
 0xef7   :  { %2483 = vtanh.f32 %v1079_v46 }
 0xef8   :  { %v2478_v52 = vpop.eup %2477 }
 0xef9   :  { %v1086_v53 = vadd.f32 1.0, %v2478_v52  ;;  %v2480_v54 = vpop.eup %2479 }
 0xefb   :  { %2485 = vrcp.f32 %v1086_v53 }
 0xf00   :  { %v2482_v55 = vpop.eup %2481 }
 0xf01   :  { %v1189_v56 = vsel %vm2616_vm5, %v2480_v54, %v2482_v55  ;;  %v2484_v57 = vpop.eup %2483 }
 0xf02   :  { %1192 = vrot.lane.b32.xlu0 %v1189_v56, %s2534_s30  ;;  %v1190_v1 = vmul.f32 %v1189_v56, %v2837_v23 }
 0xf05   :  { %v2486_v58 = vpop.eup %2485 }
 0xf06   :  { %v1089_v59 = vsel %vm2616_vm5, %v2484_v57, %v2486_v58 }
 0xf07   :  { %1092 = vrot.lane.b32.xlu1 %v1089_v59, %s2534_s30  ;;  %v1090_v6 = vmul.f32 %v1089_v59, %v2841_v26 }
 0xf74   :  { %v1193_v60 = vpop.permute.xlu0 %1192 }
 0xf75   :  { %v1195_v61 = vmul.f32 %v1193_v60, %v1189_v56 }
 0xf77   :  { %1197 = vrot.lane.b32.xlu0 %v1195_v61, %s2535_s7 }
 0xf79   :  { %v1093_v62 = vpop.permute.xlu1 %1092 }
 0xf7a   :  { %v1095_v63 = vmul.f32 %v1093_v62, %v1089_v59 }
 0xf7c   :  { %1097 = vrot.lane.b32.xlu1 %v1095_v63, %s2535_s7 }
 0xfe9   :  { %v1198_v2 = vpop.permute.xlu0 %1197 }
 0xfea   :  { %v2880_v3 = vadd.f32 %v1198_v2, %v1190_v1 }
 0xfec   :  { %2487 = vtanh.f32 %v2880_v3 }
 0xfee   :  { %v1098_v8 = vpop.permute.xlu1 %1097 }
 0xfef   :  { %v2884_v9 = vadd.f32 %v1098_v8, %v1090_v6 }
 0xff1   :  { %2489 = vtanh.f32 %v2884_v9 }
 0xff6   :  { %v2488_v10 = vpop.eup %2487 }
 0xff7   :  { %1203 = vrot.lane.b32.xlu0 %v2488_v10, %s2534_s30 }
 0xffb   :  { %v2490_v11 = vpop.eup %2489 }
 0xffc   :  { %1103 = vrot.lane.b32.xlu1 %v2490_v11, %s2534_s30 }
0x1069   :  { %v1204_v12 = vpop.permute.xlu0 %1203 }
0x106a   :  { %v1206_v13 = vmul.f32 %v1204_v12, %v1189_v56 }
0x106c   :  { %1208 = vrot.lane.b32.xlu1 %v1206_v13, %s2535_s7 }
0x106e   :  { %v1104_v14 = vpop.permute.xlu1 %1103 }
0x106f   :  { %v1106_v15 = vmul.f32 %v1104_v14, %v1089_v59 }
0x1071   :  { %1212 = vrot.lane.b32.xlu0 %v1106_v15, %s2534_s30 }
0x10de   :  { %v1209_v16 = vpop.permute.xlu1 %1208 }
0x10df   :  { %2185 = vmatmul.mubr.msk.f32.vlgmr.msra.gmra.mrb[10].mxu1 %vm63_vm2, %v1209_v16 }
0x10e0   :  { %2363 = vmatpush3.bf16.msra.mxu1 %v2637_v32  ;;  %2203 = vmatprep.mubr.msk.f32.mxu1 %vm2532_vm1, %v2533_v4 }
0x10e1   :  { %2364 = vmatprep.subr.bf16.mxu1 %v2531_v0 }
0x10e3   :  { %v1213_v17 = vpop.permute.xlu0 %1212 }
0x10e4   :  { %v1215_v19 = vsel %vm63_vm2, %v1209_v16, %v1213_v17  ;;  %2366 = vmatpush3.bf16.msra.mxu1 %v2643_v34 }
0x10e5   :  { %2174 = vmatmul.mubr.msk.f32.vlgmr.msra.gmra.mrb[12].mxu0 %vm176_vm6, %v1215_v19  ;;  %2367 = vmatprep.subr.bf16.mxu1 %v2531_v0 }
0x10e6   :  { %2375 = vmatpush3.bf16.msra.mxu0 %v2592_v5  ;;  %2214 = vmatprep.mubr.msk.f32.mxu0 %vm2532_vm1, %v2533_v4  ;;  %v1867_v5 = vld [vmem:[%s3000_s0 + $0xc] sm:$0x3] }
0x10e7   :  { %2376 = vmatprep.subr.bf16.mxu0 %v2531_v0 }
0x10e8   :  { %2369 = vmatpush3.bf16.msra.mxu1 %v2653_v37 }
0x10e9   :  { %2370 = vmatprep.subr.bf16.mxu1 %v2531_v0 }
0x10ea   :  { %2378 = vmatpush3.bf16.msra.mxu0 %v2601_v7 }
0x10eb   :  { %2379 = vmatprep.subr.bf16.mxu0 %v2531_v0 }
0x10ec   :  { %2372 = vmatpush3.bf16.msra.mxu1 %v2664_v42 }
0x10ed   :  { %2391 = vmatprep.subr.bf16.mxu1 %v2531_v0 }
0x11b2   :  { %v1384_v20 = vpop.f32.mrb[10].mxu1 }
0x11b3   :  { %v1388_v21 = vadd.f32 %v1867_v5, %v1384_v20  ;;  %v2186_v22 = vpop.f32.mrb[11].mxu1 }
0x11b5   :  { %v1869_v23 = vmul.f32 -1.442695, %v1388_v21 }
0x11b7   :  { %2491 = vpow2.f32 %v1869_v23 }
0x11b8   :  { %v1285_v24 = vpop.f32.mrb[12].mxu0 }
0x11b9   :  { %v1286_v25 = vadd.f32 %v2696_v49, %v1285_v24  ;;  %v2175_v26 = vpop.f32.mrb[13].mxu0 }
0x11bb   :  { %v1866_v7 = vmul.f32 -1.442695, %v1286_v25 }
0x11bd   :  { %2493 = vpow2.f32 %v1866_v7 }
0x11be   :  { %2495 = vtanh.f32 %v1388_v21 }
0x11c1   :  { %v2492_v27 = vpop.eup %2491 }
0x11c2   :  { %v1393_v28 = vadd.f32 1.0, %v2492_v27 }
0x11c4   :  { %2497 = vrcp.f32 %v1393_v28 }
0x11c5   :  { %2499 = vtanh.f32 %v1286_v25 }
0x11c7   :  { %v2494_v29 = vpop.eup %2493 }
0x11c8   :  { %v1293_v30 = vadd.f32 1.0, %v2494_v29  ;;  %v2496_v31 = vpop.eup %2495 }
0x11ca   :  { %2501 = vrcp.f32 %v1293_v30 }
0x11ce   :  { %v2498_v33 = vpop.eup %2497 }
0x11cf   :  { %v1396_v35 = vsel %vm2616_vm5, %v2496_v31, %v2498_v33  ;;  %v2500_v36 = vpop.eup %2499 }
0x11d0   :  { %1399 = vrot.lane.b32.xlu0 %v1396_v35, %s2534_s30  ;;  %v1397_v45 = vmul.f32 %v1396_v35, %v2880_v3 }
0x11d4   :  { %v2502_v38 = vpop.eup %2501 }
0x11d5   :  { %v1296_v39 = vsel %vm2616_vm5, %v2500_v36, %v2502_v38 }
0x11d6   :  { %1299 = vrot.lane.b32.xlu1 %v1296_v39, %s2534_s30  ;;  %v1297_v48 = vmul.f32 %v1296_v39, %v2884_v9 }
0x1242   :  { %v1400_v40 = vpop.permute.xlu0 %1399 }
0x1243   :  { %v1402_v41 = vmul.f32 %v1400_v40, %v1396_v35 }
0x1245   :  { %1404 = vrot.lane.b32.xlu0 %v1402_v41, %s2535_s7 }
0x1248   :  { %v1300_v43 = vpop.permute.xlu1 %1299 }
0x1249   :  { %v1302_v44 = vmul.f32 %v1300_v43, %v1296_v39 }
0x124b   :  { %1304 = vrot.lane.b32.xlu1 %v1302_v44, %s2535_s7 }
0x12b7   :  { %v1405_v46 = vpop.permute.xlu0 %1404 }
0x12b8   :  { %v2923_v47 = vadd.f32 %v1405_v46, %v1397_v45 }
0x12ba   :  { %2503 = vtanh.f32 %v2923_v47 }
0x12bd   :  { %v1305_v50 = vpop.permute.xlu1 %1304 }
0x12be   :  { %v2927_v51 = vadd.f32 %v1305_v50, %v1297_v48 }
0x12c0   :  { %2505 = vtanh.f32 %v2927_v51 }
0x12c4   :  { %v2504_v52 = vpop.eup %2503 }
0x12c5   :  { %1410 = vrot.lane.b32.xlu0 %v2504_v52, %s2534_s30  ;;  %v1749_v52 = vld [vmem:[%s3003_s4 + $0x8] sm:$0xff] }
0x12ca   :  { %v2506_v53 = vpop.eup %2505 }
0x12cb   :  { %1310 = vrot.lane.b32.xlu1 %v2506_v53, %s2534_s30 }
0x1337   :  { %v1411_v54 = vpop.permute.xlu0 %1410 }
0x1338   :  { %v1413_v55 = vmul.f32 %v1411_v54, %v1396_v35  ;;  %v1751_v54 = vld [vmem:[%s3003_s4 + $0x18] sm:$0xff] }
0x133a   :  { %1415 = vrot.lane.b32.xlu1 %v1413_v55, %s2535_s7  ;;  %v2395_v55 = vpack.c.bf16 %v1751_v54, %v1750_v18 }
0x133d   :  { %v1311_v56 = vpop.permute.xlu1 %1310 }
0x133e   :  { %v1313_v57 = vmul.f32 %v1311_v56, %v1296_v39 }
0x1340   :  { %1419 = vrot.lane.b32.xlu0 %v1313_v57, %s2534_s30  ;;  %v11_v57 = vstv %s3004_s5 }
0x1341   :  { %12 = vst [vmem:[#allocation6] sm:$0x1] %v11_v57 }
0x13ac   :  { %v1416_v58 = vpop.permute.xlu1 %1415 }
0x13ad   :  { %2215 = vmatmul.mubr.msk.f32.vlgmr.msra.gmra.mrb[14].mxu0 %vm63_vm2, %v1416_v58 }
0x13ae   :  { %2381 = vmatpush3.bf16.msra.mxu0 %v2637_v32  ;;  %2233 = vmatprep.mubr.msk.f32.mxu0 %vm2532_vm1, %v2533_v4  ;;  %v1872_v32 = vld [vmem:[%s3000_s0 + $0xe] sm:$0x3] }
0x13af   :  { %2382 = vmatprep.subr.bf16.mxu0 %v2531_v0 }
0x13b2   :  { %v1420_v59 = vpop.permute.xlu0 %1419  ;;  %2384 = vmatpush3.bf16.msra.mxu0 %v2643_v34 }
0x13b3   :  { %v1422_v60 = vsel %vm63_vm2, %v1416_v58, %v1420_v59  ;;  %2385 = vmatprep.subr.bf16.mxu0 %v2531_v0 }
0x13b4   :  { %2204 = vmatmul.mubr.msk.f32.vlgmr.msra.gmra.mrb[12].mxu1 %vm176_vm6, %v1422_v60 }
0x13b5   :  { %2244 = vmatprep.mubr.msk.f32.mxu1 %vm2532_vm1, %v2533_v4 }
0x13b6   :  { %2387 = vmatpush3.bf16.msra.mxu0 %v2653_v37 }
0x13b7   :  { %2388 = vmatprep.subr.bf16.mxu0 %v2531_v0 }
0x13ba   :  { %2390 = vmatpush3.bf16.msra.mxu0 %v2664_v42 }
0x1480   :  { %v1591_v34 = vpop.f32.mrb[14].mxu0 }
0x1481   :  { %v1595_v61 = vadd.f32 %v1872_v32, %v1591_v34  ;;  %v2216_v62 = vpop.f32.mrb[15].mxu0  ;;  %v1877_v34 = vld [vmem:[#allocation6] ss:$0 sm:$0xff] }
0x1483   :  { %v1874_v63 = vmul.f32 -1.442695, %v1595_v61 }
0x1485   :  { %2507 = vpow2.f32 %v1874_v63 }
0x1487   :  { %v1492_v1 = vpop.f32.mrb[12].mxu1 }
0x1488   :  { %v1493_v2 = vadd.f32 %v2696_v49, %v1492_v1  ;;  %v2205_v3 = vpop.f32.mrb[13].mxu1 }
0x148a   :  { %v1871_v4 = vmul.f32 -1.442695, %v1493_v2 }
0x148c   :  { %2509 = vpow2.f32 %v1871_v4 }
0x148d   :  { %2511 = vtanh.f32 %v1595_v61 }
0x148f   :  { %v2508_v37 = vpop.eup %2507 }
0x1490   :  { %v1600_v6 = vadd.f32 1.0, %v2508_v37 }
0x1492   :  { %2513 = vrcp.f32 %v1600_v6 }
0x1493   :  { %2515 = vtanh.f32 %v1493_v2 }
0x1496   :  { %v2510_v42 = vpop.eup %2509 }
0x1497   :  { %v1500_v8 = vadd.f32 1.0, %v2510_v42  ;;  %v2512_v9 = vpop.eup %2511 }
0x1499   :  { %2517 = vrcp.f32 %v1500_v8 }
0x149c   :  { %v2514_v10 = vpop.eup %2513 }
0x149d   :  { %v1603_v11 = vsel %vm2616_vm5, %v2512_v9, %v2514_v10  ;;  %v2516_v12 = vpop.eup %2515 }
0x149e   :  { %1606 = vrot.lane.b32.xlu0 %v1603_v11, %s2534_s30  ;;  %v1604_v5 = vmul.f32 %v1603_v11, %v2923_v47 }
0x14a3   :  { %v2518_v13 = vpop.eup %2517 }
0x14a4   :  { %v1503_v14 = vsel %vm2616_vm5, %v2516_v12, %v2518_v13 }
0x14a5   :  { %1506 = vrot.lane.b32.xlu1 %v1503_v14, %s2534_s30  ;;  %v1504_v22 = vmul.f32 %v1503_v14, %v2927_v51  ;;  %v1748_v51 = vld [vmem:[%s3003_s4] sm:$0xff] }
0x14a6   :  { %v2392_v53 = vpack.c.bf16 %v1749_v52, %v1748_v51 }
0x14a8   :  { %2393 = vmatpush3.bf16.msra.mxu1 %v2392_v53 }
0x14a9   :  { %2394 = vmatprep.subr.bf16.mxu1 %v2531_v0 }
0x14ac   :  { %2396 = vmatpush3.bf16.msra.mxu1 %v2395_v55 }
0x1510   :  { %v1607_v15 = vpop.permute.xlu0 %1606 }
0x1511   :  { %v1609_v16 = vmul.f32 %v1607_v15, %v1603_v11 }
0x1513   :  { %1611 = vrot.lane.b32.xlu0 %v1609_v16, %s2535_s7 }
0x1517   :  { %v1507_v17 = vpop.permute.xlu1 %1506 }
0x1518   :  { %v1509_v19 = vmul.f32 %v1507_v17, %v1503_v14 }
0x151a   :  { %1511 = vrot.lane.b32.xlu1 %v1509_v19, %s2535_s7 }
0x1585   :  { %v1612_v20 = vpop.permute.xlu0 %1611 }
0x1586   :  { %v1614_v21 = vadd.f32 %v1612_v20, %v1604_v5 }
0x1588   :  { %2519 = vtanh.f32 %v1614_v21 }
0x158c   :  { %v1512_v23 = vpop.permute.xlu1 %1511 }
0x158d   :  { %v1514_v24 = vadd.f32 %v1512_v23, %v1504_v22 }
0x158f   :  { %2521 = vtanh.f32 %v1514_v24 }
0x1592   :  { %v2520_v25 = vpop.eup %2519 }
0x1593   :  { %1617 = vrot.lane.b32.xlu0 %v2520_v25, %s2534_s30 }
0x1599   :  { %v2522_v26 = vpop.eup %2521 }
0x159a   :  { %1517 = vrot.lane.b32.xlu1 %v2522_v26, %s2534_s30 }
0x1605   :  { %v1618_v7 = vpop.permute.xlu0 %1617 }
0x1606   :  { %v1620_v27 = vmul.f32 %v1618_v7, %v1603_v11 }
0x1608   :  { %1622 = vrot.lane.b32.xlu1 %v1620_v27, %s2535_s7 }
0x160c   :  { %v1518_v28 = vpop.permute.xlu1 %1517 }
0x160d   :  { %v1520_v29 = vmul.f32 %v1518_v28, %v1503_v14 }
0x160f   :  { %1626 = vrot.lane.b32.xlu0 %v1520_v29, %s2534_s30 }
0x167a   :  { %v1623_v30 = vpop.permute.xlu1 %1622 }
0x167b   :  { %1729 = vst.msk [vmem:[#allocation2] sm:$0x3] %vm29_vm0, %v1623_v30 }
0x1681   :  { %v1627_v31 = vpop.permute.xlu0 %1626 }
0x1682   :  { %v1629_v33 = vsel %vm63_vm2, %v1623_v30, %v1627_v31 }
0x1683   :  { %2234 = vmatmul.mubr.msk.f32.vlgmr.msra.gmra.mrb[16].mxu0 %vm176_vm6, %v1629_v33 }
0x1756   :  { %v1699_v35 = vpop.f32.mrb[16].mxu0 }
0x1757   :  { %v1700_v36 = vadd.f32 %v2696_v49, %v1699_v35  ;;  %v2235_v38 = vpop.f32.mrb[17].mxu0 }
0x1759   :  { %v1876_v39 = vmul.f32 -1.442695, %v1700_v36 }
0x175b   :  { %2523 = vpow2.f32 %v1876_v39 }
0x175c   :  { %2525 = vtanh.f32 %v1700_v36 }
0x1765   :  { %v2524_v40 = vpop.eup %2523 }
0x1766   :  { %v1707_v41 = vadd.f32 1.0, %v2524_v40  ;;  %v2526_v43 = vpop.eup %2525 }
0x1768   :  { %2527 = vrcp.f32 %v1707_v41 }
0x1772   :  { %v2528_v44 = vpop.eup %2527 }
0x1773   :  { %v1710_v45 = vsel %vm2616_vm5, %v2526_v43, %v2528_v44 }
0x1774   :  { %1713 = vrot.lane.b32.xlu1 %v1710_v45, %s2534_s30  ;;  %v1711_v48 = vmul.f32 %v1710_v45, %v1514_v24 }
0x17e6   :  { %v1714_v46 = vpop.permute.xlu1 %1713 }
0x17e7   :  { %v1716_v47 = vmul.f32 %v1714_v46, %v1710_v45 }
0x17e9   :  { %1718 = vrot.lane.b32.xlu0 %v1716_v47, %s2535_s7 }
0x185b   :  { %v1719_v49 = vpop.permute.xlu0 %1718 }
0x185c   :  { %v1721_v50 = vadd.f32 %v1719_v49, %v1711_v48 }
0x185e   :  { %2529 = vtanh.f32 %v1721_v50 }
0x1868   :  { %v2530_v56 = vpop.eup %2529 }
0x1869   :  { %1724 = vrot.lane.b32.xlu1 %v2530_v56, %s2534_s30 }
0x186d   :  { %1731 = vrot.lane.b32.xlu1 %v1614_v21, %s2536_s22 }
0x18db   :  { %v1725_v58 = vpop.permute.xlu1 %1724 }
0x18dc   :  { %v1727_v59 = vmul.f32 %v1725_v58, %v1710_v45 }
0x18de   :  { %1736 = vrot.lane.b32.xlu0 %v1727_v59, %s2535_s7 }
0x18df   :  { %v1732_v60 = vpop.permute.xlu1 %1731 }
0x18e0   :  { %1734 = vst.msk [vmem:[#allocation3] sm:$0x3] %vm29_vm0, %v1732_v60 }
0x18e2   :  { %1741 = vrot.lane.b32.xlu0 %v1721_v50, %s2536_s22 }
0x1950   :  { %v1737_v0 = vpop.permute.xlu0 %1736 }
0x1951   :  { %1739 = vst.msk [vmem:[#allocation4] sm:$0x3] %vm29_vm0, %v1737_v0  ;;  %2245 = vmatmul.mubr.msk.f32.vlgmr.msra.gmra.mrb[14].mxu1 %vm63_vm2, %v1737_v0 }
0x1954   :  { %v1742_v32 = vpop.permute.xlu0 %1741 }
0x1955   :  { %1744 = vst.msk [vmem:[#allocation5] sm:$0x3] %vm29_vm0, %v1742_v32 }
0x1a24   :  { %v1827_v61 = vpop.f32.mrb[14].mxu1 }
0x1a25   :  { %v1828_v62 = vadd.f32 %v1877_v34, %v1827_v61  ;;  %v2246_v63 = vpop.f32.mrb[15].mxu1 }
0x1a27   :  { %1832 = vst.msk [vmem:[%s3005_s6] sm:$0x3] %vm1831_vm7, %v1828_v62 }

</bundles_post_ra>
